<compile_context>
chip_gen: v7x
topology: tpu7x:2x2x1
jax: 0.10.0
libtpu: 0.0.40
codegen_flags: <defaults>
</compile_context>

<pallas_src>
import math

import jax
import jax.numpy as jnp
from jax.experimental import pallas as pl
from jax.experimental.pallas import tpu as pltpu


def _round_up(x, m):
    return (x + m - 1) // m * m


def _classifier_kernel(x_ref, w_emb_ref, b_emb_ref, w_out_ref, b_out_ref, o_ref):
    # x_ref:     [TB, Dp]  bf16   (streamed batch tile)
    # w_emb_ref: [Dp, Hp]  bf16   (VMEM-resident across grid steps)
    # b_emb_ref: [1, Hp]   f32
    # w_out_ref: [1, Hp]   f32    (out.weight laid out as a row)
    # b_out_ref: [1, 1]    f32    (scalar, SMEM)
    # o_ref:     [1, TB]   f32    (lane-dense logits row)
    h = jnp.dot(x_ref[...], w_emb_ref[...],
                preferred_element_type=jnp.float32)          # MXU, f32 acc
    h = jnp.maximum(h + b_emb_ref[...], 0.0)                 # f32 bias + ReLU (VPU)
    # H -> 1 projection: VPU multiply + lane reduction (avoids an N=1 MXU matmul).
    y = jnp.sum(h * w_out_ref[...], axis=-1)                 # [TB] f32
    y = y + b_out_ref[0, 0]                                  # scalar bias from SMEM
    o_ref[0, :] = y.astype(o_ref.dtype)


def classifier_forward(x, w_emb, b_emb, w_out, b_out, *, tb=512):
    """Fused Classifier forward: relu(x @ W_emb + b_emb) @ w_out + b_out.

    x:     [B, D_in] f32
    w_emb: [D_in, H] f32 (sae.embedding.weight transposed vs PyTorch)
    b_emb: [1, H]    f32
    w_out: [H, 1]    f32 (out.weight transposed vs PyTorch)
    b_out: [1, 1]    f32
    returns: [B] f32 logits (matches `.squeeze()` of a [B, 1] output).
    """
    B, D_in = x.shape
    H = w_emb.shape[1]

    # --- pad to lane/sublane-friendly shapes (zero padding is exact here) ---
    tb = min(tb, _round_up(B, 128))
    Bp = _round_up(B, tb)
    Dp = _round_up(D_in, 128)
    Hp = _round_up(H, 128)

    x_p = jnp.pad(x, ((0, Bp - B), (0, Dp - D_in)))
    w_emb_p = jnp.pad(w_emb, ((0, Dp - D_in), (0, Hp - H)))
    b_emb_p = jnp.pad(b_emb, ((0, 0), (0, Hp - H))).astype(jnp.float32)
    w_out_row = jnp.pad(w_out.reshape(1, H), ((0, 0), (0, Hp - H))).astype(jnp.float32)
    b_out_s = b_out.reshape(1, 1).astype(jnp.float32)

    # bf16 inputs for the MXU; accumulation stays f32 inside the kernel.
    x_bf = x_p.astype(jnp.bfloat16)
    w_bf = w_emb_p.astype(jnp.bfloat16)

    num_tiles = Bp // tb

    cost = pl.CostEstimate(
        flops=2 * Bp * Dp * Hp + 4 * Bp * Hp,
        transcendentals=0,
        bytes_accessed=(x_bf.size * 2 + w_bf.size * 2 + b_emb_p.size * 4
                        + w_out_row.size * 4 + 4 + Bp * 4),
    )

    out = pl.pallas_call(
        _classifier_kernel,
        out_shape=jax.ShapeDtypeStruct((1, Bp), jnp.float32),
        grid=(num_tiles,),
        in_specs=[
            # Streamed batch tiles (double-buffered by the Pallas pipeline).
            pl.BlockSpec((tb, Dp), lambda i: (i, 0)),
            # Weights/bias: constant index_map -> stay resident in VMEM.
            pl.BlockSpec((Dp, Hp), lambda i: (0, 0)),
            pl.BlockSpec((1, Hp), lambda i: (0, 0)),
            pl.BlockSpec((1, Hp), lambda i: (0, 0)),
            # Scalar output bias lives in SMEM.
            pl.BlockSpec(memory_space=pltpu.MemorySpace.SMEM),
        ],
        # Lane-dense logits row: batch on the lane axis -> unmasked stores.
        out_specs=pl.BlockSpec((1, tb), lambda i: (0, i)),
        compiler_params=pltpu.CompilerParams(
            dimension_semantics=("parallel",),
        ),
        cost_estimate=cost,
    )(x_bf, w_bf, b_emb_p, w_out_row, b_out_s)

    # `.squeeze()` + drop batch padding (glue, stays in plain JAX).
    return out[0, :B]


def _init_linear(key, fan_in, fan_out):
    """PyTorch-style nn.Linear init (uniform +-1/sqrt(fan_in)).

    Returns weight already transposed to [fan_in, fan_out] and bias [1, fan_out].
    """
    kw, kb = jax.random.split(key)
    bound = 1.0 / math.sqrt(fan_in)
    w = jax.random.uniform(kw, (fan_in, fan_out), jnp.float32, -bound, bound)
    b = jax.random.uniform(kb, (1, fan_out), jnp.float32, -bound, bound)
    return w, b


if __name__ == "__main__":
    # Small shapes; intentionally not 128-multiples to exercise padding paths,
    # with enough batch rows for a multi-step pipelined grid.
    B = 1000       # batch (pads to 1024 -> 4 grid steps at tb=256)
    D_IN = 96      # input feature dim fed into sae.embedding (pads to 128)
    HIDDEN = 160   # hidden_layer_size (pads to 256)

    key = jax.random.PRNGKey(0)
    k_x, k_emb, k_out = jax.random.split(key, 3)

    x = jax.random.normal(k_x, (B, D_IN), jnp.float32)
    w_emb, b_emb = _init_linear(k_emb, D_IN, HIDDEN)   # sae.embedding
    w_out, b_out = _init_linear(k_out, HIDDEN, 1)      # self.out

    logits = classifier_forward(x, w_emb, b_emb, w_out, b_out, tb=256)
    logits = jax.block_until_ready(logits)

    # Pure-JAX reference with identical bf16-in / f32-accumulate matmul semantics.
    h_ref = jnp.maximum(
        jnp.dot(x.astype(jnp.bfloat16), w_emb.astype(jnp.bfloat16),
                preferred_element_type=jnp.float32) + b_emb, 0.0)
    y_ref = jnp.sum(h_ref * w_out.reshape(1, -1), axis=-1) + b_out[0, 0]

    assert logits.shape == (B,)
    assert jnp.allclose(logits, y_ref, atol=1e-3, rtol=1e-3), (
        float(jnp.max(jnp.abs(logits - y_ref))))

    print("KERNEL_OK")
</pallas_src>

<mosaic_0001>
module attributes {stable_mosaic.version = 11 : i64} {
  func.func @_classifier_kernel(%arg0: i32, %arg1: memref<256x128xbf16, #tpu.memory_space<vmem>>, %arg2: memref<128x256xbf16, #tpu.memory_space<vmem>>, %arg3: memref<1x256xf32, #tpu.memory_space<vmem>>, %arg4: memref<1x256xf32, #tpu.memory_space<vmem>>, %arg5: memref<1x1xf32, #tpu.memory_space<smem>>, %arg6: memref<1x256xf32, #tpu.memory_space<vmem>>) attributes {dimension_semantics = [#tpu.dimension_semantics<parallel>], iteration_bounds = array<i64: 4>, scalar_prefetch = 0 : i64, scratch_operands = 0 : i64, tpu.core_type = #tpu.core_type<tc>, window_params = [{transform_indices = @transform_0, window_bounds = array<i64: 256, 128>}, {pipeline_mode = #tpu.pipeline_mode<synchronous>, transform_indices = @transform_1, window_bounds = array<i64: 128, 256>}, {pipeline_mode = #tpu.pipeline_mode<synchronous>, transform_indices = @transform_2, window_bounds = array<i64: 1, 256>}, {pipeline_mode = #tpu.pipeline_mode<synchronous>, transform_indices = @transform_3, window_bounds = array<i64: 1, 256>}, {transform_indices = @transform_4, window_bounds = array<i64: 1, 1>}, {transform_indices = @transform_5, window_bounds = array<i64: 1, 256>}]} {
    %c0 = arith.constant 0 : index
    %c0_0 = arith.constant 0 : index
    %0 = vector.load %arg1[%c0, %c0_0] : memref<256x128xbf16, #tpu.memory_space<vmem>>, vector<256x128xbf16>
    %c0_1 = arith.constant 0 : index
    %c0_2 = arith.constant 0 : index
    %1 = vector.load %arg2[%c0_1, %c0_2] : memref<128x256xbf16, #tpu.memory_space<vmem>>, vector<128x256xbf16>
    %cst = arith.constant dense<0.000000e+00> : vector<256x256xf32>
    %2 = tpu.matmul %0, %1, %cst {dimension_numbers = #tpu.dot_dimension_numbers<[1], [0], [0], [1], [0, 0, 1, 1], [], []>} : vector<256x128xbf16>, vector<128x256xbf16>, vector<256x256xf32> -> vector<256x256xf32>
    %c0_3 = arith.constant 0 : index
    %c0_4 = arith.constant 0 : index
    %3 = vector.load %arg3[%c0_3, %c0_4] : memref<1x256xf32, #tpu.memory_space<vmem>>, vector<1x256xf32>
    %4 = vector.broadcast %3 : vector<1x256xf32> to vector<256x256xf32>
    %5 = arith.addf %2, %4 : vector<256x256xf32>
    %cst_5 = arith.constant 0.000000e+00 : f32
    %6 = vector.broadcast %cst_5 : f32 to vector<256x256xf32>
    %7 = arith.maximumf %5, %6 : vector<256x256xf32>
    %c0_6 = arith.constant 0 : index
    %c0_7 = arith.constant 0 : index
    %8 = vector.load %arg4[%c0_6, %c0_7] : memref<1x256xf32, #tpu.memory_space<vmem>>, vector<1x256xf32>
    %9 = vector.broadcast %8 : vector<1x256xf32> to vector<256x256xf32>
    %10 = arith.mulf %7, %9 : vector<256x256xf32>
    %cst_8 = arith.constant dense<0.000000e+00> : vector<256xf32>
    %11 = vector.multi_reduction <add>, %10, %cst_8 [1] : vector<256x256xf32> to vector<256xf32>
    %c0_9 = arith.constant 0 : index
    %c0_10 = arith.constant 0 : index
    %12 = memref.load %arg5[%c0_9, %c0_10] : memref<1x1xf32, #tpu.memory_space<smem>>
    %13 = vector.broadcast %12 : f32 to vector<256xf32>
    %14 = arith.addf %11, %13 : vector<256xf32>
    %c0_11 = arith.constant 0 : index
    %c0_12 = arith.constant 0 : index
    %15 = vector.load %arg6[%c0_11, %c0_12] : memref<1x256xf32, #tpu.memory_space<vmem>>, vector<1x256xf32>
    %16 = vector.shape_cast %15 : vector<1x256xf32> to vector<256xf32>
    %17 = vector.shape_cast %14 : vector<256xf32> to vector<1x256xf32>
    tpu.vector_store %arg6[%c0_11, %c0_12], %17 {strides = array<i32>} : memref<1x256xf32, #tpu.memory_space<vmem>>, vector<1x256xf32>,
    return
  }
  func.func @transform_0(%arg0: i32) -> (i32, i32) {
    %c0_i32 = arith.constant 0 : i32
    %c0_i32_0 = arith.constant 0 : i32
    return %arg0, %c0_i32 : i32, i32
  }
  func.func @transform_1(%arg0: i32) -> (i32, i32) {
    %c0_i32 = arith.constant 0 : i32
    %c0_i32_0 = arith.constant 0 : i32
    %c0_i32_1 = arith.constant 0 : i32
    return %c0_i32, %c0_i32_0 : i32, i32
  }
  func.func @transform_2(%arg0: i32) -> (i32, i32) {
    %c0_i32 = arith.constant 0 : i32
    %c0_i32_0 = arith.constant 0 : i32
    %c0_i32_1 = arith.constant 0 : i32
    return %c0_i32, %c0_i32_0 : i32, i32
  }
  func.func @transform_3(%arg0: i32) -> (i32, i32) {
    %c0_i32 = arith.constant 0 : i32
    %c0_i32_0 = arith.constant 0 : i32
    %c0_i32_1 = arith.constant 0 : i32
    return %c0_i32, %c0_i32_0 : i32, i32
  }
  func.func @transform_4(%arg0: i32) -> (i32, i32) {
    %c0_i32 = arith.constant 0 : i32
    %c0_i32_0 = arith.constant 0 : i32
    %c0_i32_1 = arith.constant 0 : i32
    return %c0_i32, %c0_i32_0 : i32, i32
  }
  func.func @transform_5(%arg0: i32) -> (i32, i32) {
    %c0_i32 = arith.constant 0 : i32
    %c0_i32_0 = arith.constant 0 : i32
    return %c0_i32, %arg0 : i32, i32
  }
}

</mosaic_0001>

<bundles_post_ra>
// kernel: tpu_custom_call.1
= control target key start
LH: loop header
LB: loop body
LE: loop exit
PB: predicated region body
PF: predicated region fallthrough
CT: control target
= control target key end

     0   :  { %s5624_s0 = inlined_call_operand.hbm [shape: bf16[1024,128], index: 0, kind: input, shape index: {}]   ;;  %s5625_s1 = inlined_call_operand.hbm [shape: bf16[128,256], index: 1, kind: input, shape index: {}]   ;;  %s5626_s2 = inlined_call_operand.vmem [shape: f32[1,256], index: 2, kind: input, shape index: {}]   ;;  %s5627_s3 = inlined_call_operand.vmem [shape: f32[1,256], index: 3, kind: input, shape index: {}]   ;;  %s5628_s4 = inlined_call_operand.<no memory space> [shape: f32[1,1], index: 4, kind: input, shape index: {}]   ;;  %s5629_s5 = inlined_call_operand.hbm [shape: f32[1,1024], index: 5, kind: output, shape index: {}]  }
   0x1   :  { %10 = sst [smem:[#allocation2]] %s5628_s4 }
   0x2   :  { %11 = vsyncpa [#allocation4], 0 }
   0x3   :  { %13 = vsyncpa [#allocation4 + $0x1], 0 }
   0x4   :  { %14 = vsyncpa [#allocation7], 0 }
   0x5   :  { %15 = vsyncpa [#allocation5], 0 }
   0x6   :  { %17 = vsyncpa [#allocation5 + $0x1], 0  ;;  %s4330_s20 = smov 0   ;;  %s4332_s21 = smov 0  }
   0x7   :  { %s4334_s22 = smov 0   ;;  %s4336_s23 = smov 0  }
   0x8 LB: > { %s4351_s4 = sadd.s32 4294967295, %s4286_s23   ;;  %s3987_s24 = sadd.s32 4294967294, %s4286_s23   ;;  %s4286_s23 = sphi %s4336_s23, %s5648_s23   ;;  %s4282_s22 = sphi %s4334_s22, %s5647_s22   ;;  %s4278_s21 = sphi %s4332_s21, %s5646_s21   ;;  %s4274_s20 = sphi %s4330_s20, %s5645_s20  }
   0x9   : > { %p43_p0 = scmp.ne.s32.totalorder %s4278_s21, %s4274_s20  ;;  %p5630_p1 = scmp.eq.s32.totalorder %s4351_s4, 0 }
   0xa   : > { %p157_p3 = scmp.eq.s32.totalorder %s3987_s24, 3  ;;  %p3988_p5 = scmp.ge.s32.totalorder %s4286_s23, 1 }
   0xb   : > { %p4360_p4 = por %p5630_p1, %p43_p0  ;;  %p164_p7 = scmp.lt.s32.totalorder %s4286_s23, 5 }
   0xc   : > { %p4365_p6 = por %p157_p3, %p43_p0  ;;  %s4288_s28 = smov [#allocation6]  }
   0xd   : > { %s5633_s25 = scalar_select %p4360_p4, 1, 0 }
   0xe   : > { %s5634_s26 = scalar_select %p4365_p6, 1, 0 }
   0xf   : > { %p4370_p8 = pnand %p3988_p5, %p164_p7  ;;  %s176_s29 = sshll.u32 %s4288_s28, 4  ;;  %s177_s29 = int_to_ptr.vmem [resolvable:$true] %s176_s29 }
  0x10   : > { %s4383_s6 = sadd.s32 1, %s4286_s23   ;;  %s30_s7 = sadd.s32 1, %s4282_s22 }
  0x11   : > { %s5635_s27 = scalar_select %p4370_p8, 1, 0 }
  0x12   : > { %p4061_p9 = pneg %p4370_p8  ;;  %s27_s8 = ssub.s32 %s4286_s23, %s4383_s6 }
  0x13   : > { %s4158_s11 = scalar_lea.hbm %s5625_s1, 2048 }
  0x14   : > { %p4378_p10 = pnand %p4061_p9, %p5630_p1  ;;  %p4159_p11 = scmp.ne.s32.totalorder %s5625_s1, %s4158_s11 }
  0x15   : > { %p4165_p3 = scmp.lt.u32.totalorder %s4158_s11, %s5625_s1 }
  0x16   : > { %p4160_p12 = pneg %p4378_p10 }
  0x18   : > { %p4161_p13 = pnand %p4160_p12, %p4159_p11 }
  0x1a   : > { %p4162_p0 = pneg %p4161_p13 }
  0x1c   : > { %p4167_p5 = pnand %p4165_p3, %p4162_p0 }
  0x1e   : > { %4170 = shalt.err (!%p4167_p5)
}
  0x1f   : > { %s4171_s16 = scalar_lea.vmem %s177_s29, 2048  ;;  %p4179_p2 = scmp.lt.s32.totalorder %s177_s29, %s177_s29 }
  0x20   : > { %p4172_p7 = scmp.ne.s32.totalorder %s177_s29, %s4171_s16  ;;  %p4180_p6 = scmp.lt.s32.totalorder %s4171_s16, %s4171_s16 }
  0x22   : > { %p4174_p9 = pnand %p4172_p7, %p4160_p12  ;;  %p4181_p4 = por %p4180_p6, %p4179_p2 }
  0x24   : > { %p4175_p1 = pneg %p4174_p9 }
  0x26   : > { %p4182_p8 = pnand %p4181_p4, %p4175_p1 }
  0x28   : > { %4185 = shalt.err (!%p4182_p8)
}
  0x29   : > { %s4289_s17 = smov 128   ;;  %s4290_s18 = smov 8  }
  0x2a   : > { %4064 = dma.hbm_to_vmem [thread:$0]  (!%p4378_p10), %s5625_s1, 2048, %s177_s29, [#allocation7], %s4289_s17, %s4289_s17, %s4290_s18  }
  0x2b   : > { %p28_p11 = scmp.eq.s32.totalorder %s27_s8, 0  ;;  %p37_p2 = scmp.ne.s32.totalorder %s4282_s22, %s4278_s21 }
  0x2c   : > { %p38_p1 = scmp.eq.s32.totalorder %s4286_s23, 0  ;;  %p4074_p4 = scmp.lt.s32.totalorder %s4286_s23, 4 }
  0x2d   : > { %s4409_s28 = scalar_select %p28_p11, %s4282_s22, %s30_s7  }
  0x2e   : > { %p39_p6 = por %p38_p1, %p37_p2  ;;  %p5637_p8 = scmp.eq.s32.totalorder %s4351_s4, 3 }
  0x2f   : > { %s199_s10 = sand.u32 1, %s4282_s22   ;;  %s4035_s11 = sshll.u32 %s4286_s23, 11 }
  0x30   : > { %p4413_p12 = por %p5637_p8, %p37_p2  ;;  %s3991_s12 = sshll.u32 %s199_s10, 7 }
  0x31   : > { %s4422_s14 = scalar_lea.hbm %s5624_s0, %s4035_s11  ;;  %s203_s29 = scalar_lea.vmem [#allocation3], %s3991_s12 }
  0x32   : > { %s210_s7 = sshll.u32 %s203_s29, 4  ;;  %p4424_p10 = pnand %p4074_p4, %p39_p6  ;;  %s4428_s7 = int_to_ptr.vmem [resolvable:$true] %s210_s7 }
  0x33   : > { %s4430_s15 = scalar_lea.sflag [#allocation4], %s199_s10  ;;  %s4186_s16 = scalar_lea.hbm %s4422_s14, 2048 }
  0x34   : > { %p4187_p13 = scmp.ne.s32.totalorder %s4422_s14, %s4186_s16  ;;  %p4188_p0 = pneg %p4424_p10 }
  0x35   : > { %s4191_s19 = scalar_lea.hbm %s5624_s0, 8192  ;;  %p4192_p7 = scmp.lt.u32.totalorder %s4422_s14, %s5624_s0 }
  0x36   : > { %p4189_p3 = pnand %p4188_p0, %p4187_p13  ;;  %p4193_p9 = scmp.lt.u32.totalorder %s4191_s19, %s4186_s16 }
  0x37   : > { %p4195_p2 = scmp.lt.u32.totalorder %s4186_s16, %s4422_s14 }
  0x38   : > { %p4190_p5 = pneg %p4189_p3  ;;  %p4194_p11 = por %p4193_p9, %p4192_p7 }
  0x3a   : > { %p4196_p1 = por %p4195_p2, %p4194_p11 }
  0x3c   : > { %p4197_p4 = pnand %p4196_p1, %p4190_p5 }
  0x3e   : > { %4200 = shalt.err (!%p4197_p4)
}
  0x3f   : > { %s4201_s10 = scalar_lea.vmem %s4428_s7, 2048  ;;  %s4291_s12 = smov [#allocation3]  }
  0x40   : > { %p4202_p6 = scmp.ne.s32.totalorder %s4428_s7, %s4201_s10  ;;  %s4206_s30 = sshll.u32 %s4291_s12, 4  ;;  %s4207_s30 = int_to_ptr.vmem [resolvable:$false] %s4206_s30 }
  0x41   : > { %s4208_s13 = scalar_lea.vmem %s4207_s30, 4096  ;;  %p4209_p3 = scmp.lt.s32.totalorder %s4428_s7, %s4207_s30 }
  0x42   : > { %p4204_p8 = pnand %p4202_p6, %p4188_p0  ;;  %p4210_p7 = scmp.lt.s32.totalorder %s4208_s13, %s4201_s10 }
  0x44   : > { %p4205_p13 = pneg %p4204_p8  ;;  %p4211_p9 = por %p4210_p7, %p4209_p3 }
  0x46   : > { %p4212_p11 = pnand %p4211_p9, %p4205_p13 }
  0x48   : > { %4215 = shalt.err (!%p4212_p11)
}
  0x49   : > { %s4292_s29 = smov 64   ;;  %s4293_s16 = smov 4  }
  0x4a   : > { %4068 = dma.hbm_to_vmem [thread:$0]  (!%p4424_p10), %s4422_s14, 2048, %s4428_s7, %s4430_s15, %s4292_s29, %s4292_s29, %s4293_s16  }
  0x4b   : > { %p5640_p0 = scmp.ne.s32.totalorder %s5635_s27, 0 }
  0x4c   : > { %s4461_s17 = sand.u32 (!%p5640_p0), 1, %s4278_s21   ;;  %p5641_p5 = scmp.ne.s32.totalorder (!%p5640_p0), %s5633_s25, 0 }
  0x4d   : > { %222 = sbr.rel (%p5640_p0) target bundleno = 822 (0x336), region = 40  ;;  %s3995_s18 = sshll.u32 (!%p5640_p0), %s4461_s17, 7 }
  0x4e   : > { %s225_s19 = scalar_lea.sflag (!%p5640_p0), [#allocation4], %s4461_s17  ;;  %s4465_s24 = scalar_lea.vmem (!%p5640_p0), [#allocation3], %s3995_s18 }
  0x54   : > { %4261 = dma.done.wait (%p5641_p5), %s225_s19, 2048  }
  0x55   : > { %4263 = vsyncadd (%p5641_p5), %s225_s19, 4294965248  ;;  %p5642_p10 = scmp.eq.s32.totalorder %s4351_s4, 0 }
  0x57   : > { %4265 = dma.done.wait (%p5642_p10), [#allocation7], 2048   ;;  %p5643_p2 = pmov %p5642_p10 }
  0x58   : > { %v4294_v0 = vmov 0   ;;  %v4118_v1 = vld [vmem:[#allocation6 + $0x4] ss:$8 sps:$4 sm:$0xff]   ;;  %v4120_v2 = vld [vmem:[#allocation6] ss:$8 sps:$4 sm:$0xff]   ;;  %v4146_v21 = vld [vmem:[%s4465_s24 + $0x10] sm:$0xff]   ;;  %v312_v33 = vlaneseq }
  0x59   : > { %4267 = vsyncadd (%p5643_p2), [#allocation7], 4294965248  ;;  %530 = vmatprep.mubr.bf16.mxu0 %v4294_v0  ;;  %610 = vmatprep.mubr.bf16.mxu1 %v4294_v0  ;;  %v4121_v3 = vld [vmem:[#allocation6 + $0x14] ss:$8 sps:$4 sm:$0xff]   ;;  %v4123_v4 = vld [vmem:[#allocation6 + $0x10] ss:$8 sps:$4 sm:$0xff]  }
  0x5a   : > { %4116 = vset.pattern.permute.xlu0 %v4294_v0  ;;  %4117 = vset.pattern.permute.xlu1 %v4294_v0  ;;  %v4124_v5 = vld [vmem:[#allocation6 + $0x24] ss:$8 sps:$4 sm:$0xff]   ;;  %v4126_v6 = vld [vmem:[#allocation6 + $0x20] ss:$8 sps:$4 sm:$0xff]   ;;  %v4127_v7 = vld [vmem:[#allocation6 + $0x34] ss:$8 sps:$4 sm:$0xff]  }
  0x5b   : > { %498 = vmatprep.subr.bf16.mxu0 %v4118_v1  ;;  %4037 = vmatprep.subr.bf16.mxu1 %v4118_v1  ;;  %v4129_v8 = vld [vmem:[#allocation6 + $0x30] ss:$8 sps:$4 sm:$0xff]   ;;  %v4130_v9 = vld [vmem:[#allocation6 + $0x44] ss:$8 sps:$4 sm:$0xff]   ;;  %v4132_v10 = vld [vmem:[#allocation6 + $0x40] ss:$8 sps:$4 sm:$0xff]  }
  0x5c   : > { %499 = vmatpush1.bf16.msra.mxu0 %v4120_v2  ;;  %4045 = vmatpush1.bf16.msra.mxu1 %v4120_v2  ;;  %v4133_v11 = vld [vmem:[#allocation6 + $0x54] ss:$8 sps:$4 sm:$0xff]   ;;  %v4135_v12 = vld [vmem:[#allocation6 + $0x50] ss:$8 sps:$4 sm:$0xff]   ;;  %v4136_v13 = vld [vmem:[#allocation6 + $0x64] ss:$8 sps:$4 sm:$0xff]  }
  0x5d   : > { %500 = vmatprep.subr.bf16.mxu0 %v4121_v3  ;;  %4038 = vmatprep.subr.bf16.mxu1 %v4121_v3  ;;  %v4138_v14 = vld [vmem:[#allocation6 + $0x60] ss:$8 sps:$4 sm:$0xff]   ;;  %v4139_v15 = vld [vmem:[#allocation6 + $0x74] ss:$8 sps:$4 sm:$0xff]   ;;  %v4141_v16 = vld [vmem:[#allocation6 + $0x70] ss:$8 sps:$4 sm:$0xff]  }
  0x5e   : > { %v4142_v17 = vld [vmem:[%s4465_s24] sm:$0xff]   ;;  %v4144_v19 = vld [vmem:[%s4465_s24 + $0x8] sm:$0xff]   ;;  %v4147_v22 = vld [vmem:[%s4465_s24 + $0x50] sm:$0xff]   ;;  %v4510_v34 = vshrl.u32 %v312_v33, 7  ;;  %s927_s8 = sld [smem:[#allocation2]]  ;;  %vm3692_vm0 = vcmask 130112  }
  0x5f   : > { %v4143_v18 = vld [vmem:[%s4465_s24 + $0x40] sm:$0xff]   ;;  %v4145_v20 = vld [vmem:[%s4465_s24 + $0x48] sm:$0xff]   ;;  %v4148_v23 = vld [vmem:[%s4465_s24 + $0x18] sm:$0xff]   ;;  %vm3699_vm1 = vcmask 195712   ;;  %vm3706_vm2 = vcmask 261312   ;;  %vm3713_vm3 = vcmask 326912  }
  0x60   : > { %501 = vmatpush1.bf16.msra.mxu0 %v4123_v4  ;;  %4046 = vmatpush1.bf16.msra.mxu1 %v4123_v4  ;;  %v4149_v24 = vld [vmem:[%s4465_s24 + $0x58] sm:$0xff]   ;;  %v4150_v25 = vld [vmem:[%s4465_s24 + $0x20] sm:$0xff]   ;;  %v4152_v27 = vld [vmem:[%s4465_s24 + $0x28] sm:$0xff]   ;;  %v4513_v35 = vsub.s32 0, %v4510_v34  ;;  %v4519_v37 = vsub.s32 1, %v4510_v34  ;;  %vm3720_vm4 = vcmask 392512  }
  0x61   : > { %502 = vmatprep.subr.bf16.mxu0 %v4124_v5  ;;  %4039 = vmatprep.subr.bf16.mxu1 %v4124_v5  ;;  %v4151_v26 = vld [vmem:[%s4465_s24 + $0x60] sm:$0xff]   ;;  %v4153_v28 = vld [vmem:[%s4465_s24 + $0x68] sm:$0xff]   ;;  %v4154_v29 = vld [vmem:[%s4465_s24 + $0x30] sm:$0xff]   ;;  %vm3727_vm5 = vcmask 458112   ;;  %vm3734_vm6 = vcmask 523712   ;;  %vm3741_vm7 = vcmask 589312  }
  0x62   : > { %v4155_v30 = vld [vmem:[%s4465_s24 + $0x70] sm:$0xff]   ;;  %v4156_v31 = vld [vmem:[%s4465_s24 + $0x38] sm:$0xff]   ;;  %v310_v36 = vld [vmem:[%s5626_s2] sm:$0x3]  ;;  %vm3748_vm8 = vcmask 654912   ;;  %vm3755_vm9 = vcmask 720512  }
  0x63   : > { %v4157_v32 = vld [vmem:[%s4465_s24 + $0x78] sm:$0xff]   ;;  %v4522_v38 = vrot.slane %v310_v36, %v4513_v35  ;;  %v4525_v39 = vrot.slane %v310_v36, %v4519_v37  ;;  %v755_v40 = vld [vmem:[%s5627_s3] sm:$0x3]  ;;  %vm3762_vm10 = vcmask 786112   ;;  %vm3769_vm11 = vcmask 851712   ;;  %s3997_s15 = sshll.u32 %s4461_s17, 1 }
  0x64   : > { %503 = vmatpush1.bf16.msra.mxu0 %v4126_v6  ;;  %4047 = vmatpush1.bf16.msra.mxu1 %v4126_v6  ;;  %v4533_v46 = vrot.slane %v755_v40, %v4513_v35  ;;  %v4538_v51 = vrot.slane %v755_v40, %v4519_v37  ;;  %vm3776_vm12 = vcmask 917312   ;;  %vm3783_vm13 = vcmask 982912   ;;  %s4036_s11 = sshll.u32 %s4351_s4, 5  ;;  %s258_s10 = scalar_lea.vmem [#allocation8], %s3997_s15 }
  0x65   : > { %504 = vmatprep.subr.bf16.mxu0 %v4127_v7  ;;  %4040 = vmatprep.subr.bf16.mxu1 %v4127_v7  ;;  %vm3790_vm14 = vcmask 1048512   ;;  %s3907_s12 = sshll.u32 %s258_s10, 4  ;;  %vm3889_vm15 = vcmp.lt.s32.totalorder %v312_v33, 256  ;;  %s5581_s29 = scalar_lea.hbm %s5629_s5, %s4036_s11  ;;  %s5583_s12 = int_to_ptr.vmem [resolvable:$true] %s3907_s12 }
  0x66   : > { %s3893_s4 = scalar_lea.sflag [#allocation5], %s4461_s17  ;;  %s4216_s16 = scalar_lea.vmem %s5583_s12, 32 }
  0x67   : > { %p4217_p1 = scmp.ne.s32.totalorder %s5583_s12, %s4216_s16  ;;  %s4296_s18 = smov [#allocation8]  }
  0x68   : > { %505 = vmatpush1.bf16.msra.mxu0 %v4129_v8  ;;  %4048 = vmatpush1.bf16.msra.mxu1 %v4129_v8  ;;  %s4220_s19 = sshll.u32 %s4296_s18, 4  ;;  %s4221_s19 = int_to_ptr.vmem [resolvable:$false] %s4220_s19 }
  0x69   : > { %506 = vmatprep.subr.bf16.mxu0 %v4130_v9  ;;  %4041 = vmatprep.subr.bf16.mxu1 %v4130_v9  ;;  %p4218_p4 = pnand %p4217_p1, %p4413_p12  ;;  %s4222_s24 = scalar_lea.vmem %s4221_s19, 64 }
  0x6a   : > { %p4223_p8 = scmp.lt.s32.totalorder %s5583_s12, %s4221_s19  ;;  %p4224_p13 = scmp.lt.s32.totalorder %s4222_s24, %s4216_s16 }
  0x6b   : > { %p4219_p6 = pneg %p4218_p4 }
  0x6c   : > { %507 = vmatpush1.bf16.msra.mxu0 %v4132_v10  ;;  %4049 = vmatpush1.bf16.msra.mxu1 %v4132_v10  ;;  %p4225_p3 = por %p4224_p13, %p4223_p8 }
  0x6d   : > { %508 = vmatprep.subr.bf16.mxu0 %v4133_v11  ;;  %4042 = vmatprep.subr.bf16.mxu1 %v4133_v11 }
  0x6e   : > { %p4226_p7 = pnand %p4225_p3, %p4219_p6 }
  0x70   : > { %509 = vmatpush1.bf16.msra.mxu0 %v4135_v12  ;;  %4050 = vmatpush1.bf16.msra.mxu1 %v4135_v12 }
  0x71   : > { %510 = vmatprep.subr.bf16.mxu0 %v4136_v13  ;;  %4043 = vmatprep.subr.bf16.mxu1 %v4136_v13 }
  0x74   : > { %511 = vmatpush1.bf16.msra.mxu0 %v4138_v14  ;;  %4051 = vmatpush1.bf16.msra.mxu1 %v4138_v14 }
  0x75   : > { %512 = vmatprep.subr.bf16.mxu0 %v4139_v15  ;;  %4044 = vmatprep.subr.bf16.mxu1 %v4139_v15 }
  0x78   : > { %513 = vmatpush1.bf16.msra.mxu0 %v4141_v16  ;;  %4052 = vmatpush1.bf16.msra.mxu1 %v4141_v16 }
  0x7b   : > { %531 = vmatmul.mubr.bf16.vlgmr.msra.gmra.mrb[0].mxu0 %v4142_v17  ;;  %611 = vmatmul.mubr.bf16.vlgmr.msra.gmra.mrb[0].mxu1 %v4143_v18 }
  0x7c   : > { %540 = vmatprep.mubr.bf16.mxu0 %v4294_v0  ;;  %620 = vmatprep.mubr.bf16.mxu1 %v4294_v0 }
  0x83   : > { %541 = vmatmul.mubr.bf16.gmra.mrb[4].mxu0 %v4144_v19  ;;  %621 = vmatmul.mubr.bf16.gmra.mrb[4].mxu1 %v4145_v20 }
  0x84   : > { %550 = vmatprep.mubr.bf16.mxu0 %v4294_v0  ;;  %630 = vmatprep.mubr.bf16.mxu1 %v4294_v0 }
  0x8b   : > { %551 = vmatmul.mubr.bf16.gmra.mrb[8].mxu0 %v4146_v21  ;;  %631 = vmatmul.mubr.bf16.gmra.mrb[8].mxu1 %v4147_v22 }
  0x8c   : > { %560 = vmatprep.mubr.bf16.mxu0 %v4294_v0  ;;  %640 = vmatprep.mubr.bf16.mxu1 %v4294_v0 }
  0x93   : > { %561 = vmatmul.mubr.bf16.gmra.mrb[12].mxu0 %v4148_v23  ;;  %641 = vmatmul.mubr.bf16.gmra.mrb[12].mxu1 %v4149_v24 }
  0x94   : > { %570 = vmatprep.mubr.bf16.mxu0 %v4294_v0  ;;  %650 = vmatprep.mubr.bf16.mxu1 %v4294_v0 }
  0x9b   : > { %571 = vmatmul.mubr.bf16.gmra.mrb[16].mxu0 %v4150_v25  ;;  %651 = vmatmul.mubr.bf16.gmra.mrb[16].mxu1 %v4151_v26 }
  0x9c   : > { %580 = vmatprep.mubr.bf16.mxu0 %v4294_v0  ;;  %660 = vmatprep.mubr.bf16.mxu1 %v4294_v0 }
  0xa3   : > { %581 = vmatmul.mubr.bf16.gmra.mrb[20].mxu0 %v4152_v27  ;;  %661 = vmatmul.mubr.bf16.gmra.mrb[20].mxu1 %v4153_v28 }
  0xa4   : > { %590 = vmatprep.mubr.bf16.mxu0 %v4294_v0  ;;  %670 = vmatprep.mubr.bf16.mxu1 %v4294_v0 }
  0xab   : > { %591 = vmatmul.mubr.bf16.gmra.mrb[24].mxu0 %v4154_v29  ;;  %671 = vmatmul.mubr.bf16.gmra.mrb[24].mxu1 %v4155_v30 }
  0xac   : > { %600 = vmatprep.mubr.bf16.mxu0 %v4294_v0  ;;  %680 = vmatprep.mubr.bf16.mxu1 %v4294_v0 }
  0xb3   : > { %601 = vmatmul.mubr.bf16.gmra.mrb[28].mxu0 %v4156_v31  ;;  %681 = vmatmul.mubr.bf16.gmra.mrb[28].mxu1 %v4157_v32 }
 0x14e   : > { %v532_v41 = vpop.f32.mrb[0].mxu0  ;;  %v612_v42 = vpop.f32.mrb[0].mxu1 }
 0x14f   : > { %v533_v43 = vadd.f32 %v532_v41, %v4522_v38  ;;  %v534_v44 = vpop.f32.mrb[1].mxu0  ;;  %v613_v45 = vadd.f32 %v612_v42, %v4522_v38  ;;  %v614_v47 = vpop.f32.mrb[1].mxu1 }
 0x150   : > { %v535_v48 = vadd.f32 %v534_v44, %v4525_v39  ;;  %v536_v49 = vpop.f32.mrb[2].mxu0  ;;  %v615_v50 = vadd.f32 %v614_v47, %v4525_v39  ;;  %v616_v52 = vpop.f32.mrb[2].mxu1 }
 0x151   : > { %v691_v53 = vmax.f32 %v533_v43, 0.0  ;;  %v723_v54 = vmax.f32 %v613_v45, 0.0  ;;  %v537_v55 = vadd.f32 %v536_v49, %v4522_v38  ;;  %v538_v56 = vpop.f32.mrb[3].mxu0  ;;  %v617_v57 = vadd.f32 %v616_v52, %v4522_v38  ;;  %v618_v58 = vpop.f32.mrb[3].mxu1 }
 0x152   : > { %v692_v59 = vmax.f32 %v535_v48, 0.0  ;;  %v724_v60 = vmax.f32 %v615_v50, 0.0  ;;  %v539_v61 = vadd.f32 %v538_v56, %v4525_v39  ;;  %v619_v62 = vadd.f32 %v618_v58, %v4525_v39 }
 0x153   : > { %v799_v63 = vmul.f32 %v4533_v46, %v723_v54  ;;  %v693_v0 = vmax.f32 %v537_v55, 0.0  ;;  %v725_v1 = vmax.f32 %v617_v57, 0.0  ;;  %v767_v2 = vmul.f32 %v4533_v46, %v691_v53 }
 0x154   : > { %v800_v3 = vmul.f32 %v4538_v51, %v724_v60  ;;  %v694_v4 = vmax.f32 %v539_v61, 0.0  ;;  %v726_v5 = vmax.f32 %v619_v62, 0.0  ;;  %v768_v6 = vmul.f32 %v4538_v51, %v692_v59 }
 0x155   : > { %v769_v7 = vmul.f32 %v4533_v46, %v693_v0  ;;  %v801_v8 = vmul.f32 %v4533_v46, %v725_v1 }
 0x156   : > { %v770_v9 = vmul.f32 %v4538_v51, %v694_v4  ;;  %v542_v10 = vpop.f32.mrb[4].mxu0  ;;  %v831_v11 = vadd.f32 %v768_v6, %v767_v2  ;;  %v622_v12 = vpop.f32.mrb[4].mxu1  ;;  %v802_v13 = vmul.f32 %v4538_v51, %v726_v5  ;;  %v879_v14 = vadd.f32 %v800_v3, %v799_v63 }
 0x157   : > { %v543_v15 = vadd.f32 %v542_v10, %v4522_v38  ;;  %v544_v16 = vpop.f32.mrb[5].mxu0  ;;  %v623_v17 = vadd.f32 %v622_v12, %v4522_v38  ;;  %v624_v18 = vpop.f32.mrb[5].mxu1 }
 0x158   : > { %v545_v19 = vadd.f32 %v544_v16, %v4525_v39  ;;  %832 = vadd.xlane.f32.xlu0 %v831_v11  ;;  %v546_v20 = vpop.f32.mrb[6].mxu0  ;;  %v625_v21 = vadd.f32 %v624_v18, %v4525_v39  ;;  %v882_v22 = vadd.f32 %v802_v13, %v801_v8  ;;  %v626_v23 = vpop.f32.mrb[6].mxu1  ;;  %v834_v24 = vadd.f32 %v770_v9, %v769_v7 }
 0x159   : > { %v695_v25 = vmax.f32 %v543_v15, 0.0  ;;  %v547_v26 = vadd.f32 %v546_v20, %v4522_v38  ;;  %v548_v27 = vpop.f32.mrb[7].mxu0  ;;  %v727_v28 = vmax.f32 %v623_v17, 0.0  ;;  %v627_v29 = vadd.f32 %v626_v23, %v4522_v38  ;;  %v628_v30 = vpop.f32.mrb[7].mxu1 }
 0x15a   : > { %v696_v31 = vmax.f32 %v545_v19, 0.0  ;;  %v549_v32 = vadd.f32 %v548_v27, %v4525_v39  ;;  %v728_v36 = vmax.f32 %v625_v21, 0.0  ;;  %883 = vadd.xlane.f32.xlu1 %v882_v22  ;;  %v629_v40 = vadd.f32 %v628_v30, %v4525_v39 }
 0x15b   : > { %v771_v41 = vmul.f32 %v4533_v46, %v695_v25  ;;  %v697_v42 = vmax.f32 %v547_v26, 0.0  ;;  %v803_v43 = vmul.f32 %v4533_v46, %v727_v28  ;;  %v729_v44 = vmax.f32 %v627_v29, 0.0 }
 0x15c   : > { %v772_v45 = vmul.f32 %v4538_v51, %v696_v31  ;;  %v698_v47 = vmax.f32 %v549_v32, 0.0  ;;  %v804_v48 = vmul.f32 %v4538_v51, %v728_v36  ;;  %880 = vadd.xlane.f32.xlu0 %v879_v14  ;;  %v730_v49 = vmax.f32 %v629_v40, 0.0 }
 0x15d   : > { %v773_v50 = vmul.f32 %v4533_v46, %v697_v42  ;;  %v805_v57 = vmul.f32 %v4533_v46, %v729_v44 }
 0x15e   : > { %v774_v52 = vmul.f32 %v4538_v51, %v698_v47  ;;  %v552_v53 = vpop.f32.mrb[8].mxu0  ;;  %v837_v54 = vadd.f32 %v772_v45, %v771_v41  ;;  %v632_v55 = vpop.f32.mrb[8].mxu1  ;;  %v885_v56 = vadd.f32 %v804_v48, %v803_v43  ;;  %v806_v59 = vmul.f32 %v4538_v51, %v730_v49 }
 0x15f   : > { %v553_v58 = vadd.f32 %v552_v53, %v4522_v38  ;;  %v554_v60 = vpop.f32.mrb[9].mxu0  ;;  %v633_v61 = vadd.f32 %v632_v55, %v4522_v38  ;;  %v634_v62 = vpop.f32.mrb[9].mxu1 }
 0x160   : > { %v555_v63 = vadd.f32 %v554_v60, %v4525_v39  ;;  %838 = vadd.xlane.f32.xlu1 %v837_v54  ;;  %835 = vadd.xlane.f32.xlu0 %v834_v24  ;;  %v556_v0 = vpop.f32.mrb[10].mxu0  ;;  %v635_v1 = vadd.f32 %v634_v62, %v4525_v39  ;;  %v840_v2 = vadd.f32 %v774_v52, %v773_v50  ;;  %v636_v3 = vpop.f32.mrb[10].mxu1 }
 0x161   : > { %v699_v4 = vmax.f32 %v553_v58, 0.0  ;;  %v557_v5 = vadd.f32 %v556_v0, %v4522_v38  ;;  %v731_v6 = vmax.f32 %v633_v61, 0.0  ;;  %v558_v7 = vpop.f32.mrb[11].mxu0  ;;  %v637_v8 = vadd.f32 %v636_v3, %v4522_v38  ;;  %v638_v9 = vpop.f32.mrb[11].mxu1 }
 0x162   : > { %v700_v10 = vmax.f32 %v555_v63, 0.0  ;;  %v559_v11 = vadd.f32 %v558_v7, %v4525_v39  ;;  %v732_v12 = vmax.f32 %v635_v1, 0.0  ;;  %v639_v13 = vadd.f32 %v638_v9, %v4525_v39 }
 0x163   : > { %v775_v14 = vmul.f32 %v4533_v46, %v699_v4  ;;  %v701_v15 = vmax.f32 %v557_v5, 0.0  ;;  %v807_v16 = vmul.f32 %v4533_v46, %v731_v6  ;;  %v733_v17 = vmax.f32 %v637_v8, 0.0 }
 0x164   : > { %v776_v18 = vmul.f32 %v4538_v51, %v700_v10  ;;  %v702_v19 = vmax.f32 %v559_v11, 0.0  ;;  %v808_v20 = vmul.f32 %v4538_v51, %v732_v12  ;;  %841 = vadd.xlane.f32.xlu1 %v840_v2  ;;  %886 = vadd.xlane.f32.xlu0 %v885_v56  ;;  %v734_v21 = vmax.f32 %v639_v13, 0.0 }
 0x165   : > { %v777_v22 = vmul.f32 %v4533_v46, %v701_v15  ;;  %v888_v23 = vadd.f32 %v806_v59, %v805_v57  ;;  %v809_v30 = vmul.f32 %v4533_v46, %v733_v17 }
 0x166   : > { %v778_v24 = vmul.f32 %v4538_v51, %v702_v19  ;;  %v562_v25 = vpop.f32.mrb[12].mxu0  ;;  %v843_v26 = vadd.f32 %v776_v18, %v775_v14  ;;  %v642_v27 = vpop.f32.mrb[12].mxu1  ;;  %v891_v28 = vadd.f32 %v808_v20, %v807_v16  ;;  %v810_v32 = vmul.f32 %v4538_v51, %v734_v21 }
 0x167   : > { %v563_v29 = vadd.f32 %v562_v25, %v4522_v38  ;;  %v564_v31 = vpop.f32.mrb[13].mxu0  ;;  %v643_v36 = vadd.f32 %v642_v27, %v4522_v38  ;;  %v644_v40 = vpop.f32.mrb[13].mxu1 }
 0x168   : > { %v565_v41 = vadd.f32 %v564_v31, %v4525_v39  ;;  %889 = vadd.xlane.f32.xlu1 %v888_v23  ;;  %844 = vadd.xlane.f32.xlu0 %v843_v26  ;;  %v566_v42 = vpop.f32.mrb[14].mxu0  ;;  %v645_v43 = vadd.f32 %v644_v40, %v4525_v39  ;;  %v846_v44 = vadd.f32 %v778_v24, %v777_v22  ;;  %v646_v45 = vpop.f32.mrb[14].mxu1 }
 0x169   : > { %v703_v47 = vmax.f32 %v563_v29, 0.0  ;;  %v567_v48 = vadd.f32 %v566_v42, %v4522_v38  ;;  %v735_v49 = vmax.f32 %v643_v36, 0.0  ;;  %v568_v50 = vpop.f32.mrb[15].mxu0  ;;  %v647_v52 = vadd.f32 %v646_v45, %v4522_v38  ;;  %v648_v53 = vpop.f32.mrb[15].mxu1 }
 0x16a   : > { %v704_v54 = vmax.f32 %v565_v41, 0.0  ;;  %v569_v55 = vadd.f32 %v568_v50, %v4525_v39  ;;  %v736_v56 = vmax.f32 %v645_v43, 0.0  ;;  %v649_v57 = vadd.f32 %v648_v53, %v4525_v39 }
 0x16b   : > { %v779_v58 = vmul.f32 %v4533_v46, %v703_v47  ;;  %v705_v59 = vmax.f32 %v567_v48, 0.0  ;;  %v811_v60 = vmul.f32 %v4533_v46, %v735_v49  ;;  %v737_v61 = vmax.f32 %v647_v52, 0.0 }
 0x16c   : > { %v780_v62 = vmul.f32 %v4538_v51, %v704_v54  ;;  %v706_v63 = vmax.f32 %v569_v55, 0.0  ;;  %v812_v0 = vmul.f32 %v4538_v51, %v736_v56  ;;  %847 = vadd.xlane.f32.xlu1 %v846_v44  ;;  %892 = vadd.xlane.f32.xlu0 %v891_v28  ;;  %v738_v1 = vmax.f32 %v649_v57, 0.0 }
 0x16d   : > { %v781_v2 = vmul.f32 %v4533_v46, %v705_v59  ;;  %v894_v3 = vadd.f32 %v810_v32, %v809_v30  ;;  %v813_v10 = vmul.f32 %v4533_v46, %v737_v61 }
 0x16e   : > { %v782_v4 = vmul.f32 %v4538_v51, %v706_v63  ;;  %v572_v5 = vpop.f32.mrb[16].mxu0  ;;  %v849_v6 = vadd.f32 %v780_v62, %v779_v58  ;;  %v652_v7 = vpop.f32.mrb[16].mxu1  ;;  %v897_v8 = vadd.f32 %v812_v0, %v811_v60  ;;  %v814_v12 = vmul.f32 %v4538_v51, %v738_v1 }
 0x16f   : > { %v573_v9 = vadd.f32 %v572_v5, %v4522_v38  ;;  %v574_v11 = vpop.f32.mrb[17].mxu0  ;;  %v653_v13 = vadd.f32 %v652_v7, %v4522_v38  ;;  %v654_v14 = vpop.f32.mrb[17].mxu1 }
 0x170   : > { %v575_v15 = vadd.f32 %v574_v11, %v4525_v39  ;;  %895 = vadd.xlane.f32.xlu1 %v894_v3  ;;  %850 = vadd.xlane.f32.xlu0 %v849_v6  ;;  %v576_v16 = vpop.f32.mrb[18].mxu0  ;;  %v655_v17 = vadd.f32 %v654_v14, %v4525_v39  ;;  %v852_v18 = vadd.f32 %v782_v4, %v781_v2  ;;  %v656_v19 = vpop.f32.mrb[18].mxu1 }
 0x171   : > { %v707_v20 = vmax.f32 %v573_v9, 0.0  ;;  %v577_v21 = vadd.f32 %v576_v16, %v4522_v38  ;;  %v739_v22 = vmax.f32 %v653_v13, 0.0  ;;  %v578_v23 = vpop.f32.mrb[19].mxu0  ;;  %v657_v24 = vadd.f32 %v656_v19, %v4522_v38  ;;  %v658_v25 = vpop.f32.mrb[19].mxu1 }
 0x172   : > { %v708_v26 = vmax.f32 %v575_v15, 0.0  ;;  %v579_v27 = vadd.f32 %v578_v23, %v4525_v39  ;;  %v740_v28 = vmax.f32 %v655_v17, 0.0  ;;  %v659_v29 = vadd.f32 %v658_v25, %v4525_v39 }
 0x173   : > { %v783_v30 = vmul.f32 %v4533_v46, %v707_v20  ;;  %v709_v31 = vmax.f32 %v577_v21, 0.0  ;;  %v815_v32 = vmul.f32 %v4533_v46, %v739_v22  ;;  %v741_v36 = vmax.f32 %v657_v24, 0.0 }
 0x174   : > { %v784_v40 = vmul.f32 %v4538_v51, %v708_v26  ;;  %v710_v41 = vmax.f32 %v579_v27, 0.0  ;;  %v816_v42 = vmul.f32 %v4538_v51, %v740_v28  ;;  %853 = vadd.xlane.f32.xlu1 %v852_v18  ;;  %898 = vadd.xlane.f32.xlu0 %v897_v8  ;;  %v742_v43 = vmax.f32 %v659_v29, 0.0 }
 0x175   : > { %v785_v44 = vmul.f32 %v4533_v46, %v709_v31  ;;  %v900_v45 = vadd.f32 %v814_v12, %v813_v10  ;;  %v817_v54 = vmul.f32 %v4533_v46, %v741_v36 }
 0x176   : > { %v786_v47 = vmul.f32 %v4538_v51, %v710_v41  ;;  %v582_v48 = vpop.f32.mrb[20].mxu0  ;;  %v855_v49 = vadd.f32 %v784_v40, %v783_v30  ;;  %v662_v50 = vpop.f32.mrb[20].mxu1  ;;  %v903_v52 = vadd.f32 %v816_v42, %v815_v32  ;;  %v818_v56 = vmul.f32 %v4538_v51, %v742_v43 }
 0x177   : > { %v583_v53 = vadd.f32 %v582_v48, %v4522_v38  ;;  %v584_v55 = vpop.f32.mrb[21].mxu0  ;;  %v663_v57 = vadd.f32 %v662_v50, %v4522_v38  ;;  %v664_v58 = vpop.f32.mrb[21].mxu1 }
 0x178   : > { %v585_v59 = vadd.f32 %v584_v55, %v4525_v39  ;;  %901 = vadd.xlane.f32.xlu1 %v900_v45  ;;  %856 = vadd.xlane.f32.xlu0 %v855_v49  ;;  %v586_v60 = vpop.f32.mrb[22].mxu0  ;;  %v665_v61 = vadd.f32 %v664_v58, %v4525_v39  ;;  %v858_v62 = vadd.f32 %v786_v47, %v785_v44  ;;  %v666_v63 = vpop.f32.mrb[22].mxu1 }
 0x179   : > { %v711_v0 = vmax.f32 %v583_v53, 0.0  ;;  %v587_v1 = vadd.f32 %v586_v60, %v4522_v38  ;;  %v743_v2 = vmax.f32 %v663_v57, 0.0  ;;  %v588_v3 = vpop.f32.mrb[23].mxu0  ;;  %v667_v4 = vadd.f32 %v666_v63, %v4522_v38  ;;  %v668_v5 = vpop.f32.mrb[23].mxu1 }
 0x17a   : > { %v712_v6 = vmax.f32 %v585_v59, 0.0  ;;  %v589_v7 = vadd.f32 %v588_v3, %v4525_v39  ;;  %v744_v8 = vmax.f32 %v665_v61, 0.0  ;;  %v669_v9 = vadd.f32 %v668_v5, %v4525_v39 }
 0x17b   : > { %v787_v10 = vmul.f32 %v4533_v46, %v711_v0  ;;  %v713_v11 = vmax.f32 %v587_v1, 0.0  ;;  %v819_v12 = vmul.f32 %v4533_v46, %v743_v2  ;;  %v745_v13 = vmax.f32 %v667_v4, 0.0 }
 0x17c   : > { %v788_v14 = vmul.f32 %v4538_v51, %v712_v6  ;;  %v714_v15 = vmax.f32 %v589_v7, 0.0  ;;  %v820_v16 = vmul.f32 %v4538_v51, %v744_v8  ;;  %859 = vadd.xlane.f32.xlu1 %v858_v62  ;;  %904 = vadd.xlane.f32.xlu0 %v903_v52  ;;  %v746_v17 = vmax.f32 %v669_v9, 0.0 }
 0x17d   : > { %v789_v18 = vmul.f32 %v4533_v46, %v713_v11  ;;  %v906_v19 = vadd.f32 %v818_v56, %v817_v54  ;;  %v821_v26 = vmul.f32 %v4533_v46, %v745_v13 }
 0x17e   : > { %v790_v20 = vmul.f32 %v4538_v51, %v714_v15  ;;  %v592_v21 = vpop.f32.mrb[24].mxu0  ;;  %v861_v22 = vadd.f32 %v788_v14, %v787_v10  ;;  %v672_v23 = vpop.f32.mrb[24].mxu1  ;;  %v909_v24 = vadd.f32 %v820_v16, %v819_v12  ;;  %v822_v28 = vmul.f32 %v4538_v51, %v746_v17 }
 0x17f   : > { %v593_v25 = vadd.f32 %v592_v21, %v4522_v38  ;;  %v594_v27 = vpop.f32.mrb[25].mxu0  ;;  %v673_v29 = vadd.f32 %v672_v23, %v4522_v38  ;;  %v674_v30 = vpop.f32.mrb[25].mxu1 }
 0x180   : > { %v595_v31 = vadd.f32 %v594_v27, %v4525_v39  ;;  %907 = vadd.xlane.f32.xlu1 %v906_v19  ;;  %862 = vadd.xlane.f32.xlu0 %v861_v22  ;;  %v596_v32 = vpop.f32.mrb[26].mxu0  ;;  %v675_v36 = vadd.f32 %v674_v30, %v4525_v39  ;;  %v864_v40 = vadd.f32 %v790_v20, %v789_v18  ;;  %v676_v41 = vpop.f32.mrb[26].mxu1 }
 0x181   : > { %v715_v42 = vmax.f32 %v593_v25, 0.0  ;;  %v597_v43 = vadd.f32 %v596_v32, %v4522_v38  ;;  %v747_v44 = vmax.f32 %v673_v29, 0.0  ;;  %v598_v45 = vpop.f32.mrb[27].mxu0  ;;  %v677_v47 = vadd.f32 %v676_v41, %v4522_v38  ;;  %v678_v48 = vpop.f32.mrb[27].mxu1 }
 0x182   : > { %v716_v49 = vmax.f32 %v595_v31, 0.0  ;;  %v599_v50 = vadd.f32 %v598_v45, %v4525_v39  ;;  %v748_v52 = vmax.f32 %v675_v36, 0.0  ;;  %v679_v53 = vadd.f32 %v678_v48, %v4525_v39 }
 0x183   : > { %v791_v54 = vmul.f32 %v4533_v46, %v715_v42  ;;  %v717_v55 = vmax.f32 %v597_v43, 0.0  ;;  %v823_v56 = vmul.f32 %v4533_v46, %v747_v44  ;;  %v749_v57 = vmax.f32 %v677_v47, 0.0 }
 0x184   : > { %v792_v58 = vmul.f32 %v4538_v51, %v716_v49  ;;  %v718_v59 = vmax.f32 %v599_v50, 0.0  ;;  %v824_v60 = vmul.f32 %v4538_v51, %v748_v52  ;;  %865 = vadd.xlane.f32.xlu1 %v864_v40  ;;  %910 = vadd.xlane.f32.xlu0 %v909_v24  ;;  %v750_v61 = vmax.f32 %v679_v53, 0.0 }
 0x185   : > { %v793_v62 = vmul.f32 %v4533_v46, %v717_v55  ;;  %v912_v63 = vadd.f32 %v822_v28, %v821_v26  ;;  %v825_v6 = vmul.f32 %v4533_v46, %v749_v57  ;;  %v4295_v48 = vmov 1966171168  }
 0x186   : > { %v794_v0 = vmul.f32 %v4538_v51, %v718_v59  ;;  %v602_v1 = vpop.f32.mrb[28].mxu0  ;;  %v867_v2 = vadd.f32 %v792_v58, %v791_v54  ;;  %v682_v3 = vpop.f32.mrb[28].mxu1  ;;  %v915_v4 = vadd.f32 %v824_v60, %v823_v56  ;;  %v826_v8 = vmul.f32 %v4538_v51, %v750_v61 }
 0x187   : > { %v603_v5 = vadd.f32 %v602_v1, %v4522_v38  ;;  %v604_v7 = vpop.f32.mrb[29].mxu0  ;;  %v683_v9 = vadd.f32 %v682_v3, %v4522_v38  ;;  %v684_v10 = vpop.f32.mrb[29].mxu1  ;;  %v2022_v49 = vunpack.c.l.s4 %v4295_v48  ;;  %v4664_v50 = vstv %s927_s8 }
 0x188   : > { %v605_v11 = vadd.f32 %v604_v7, %v4525_v39  ;;  %913 = vadd.xlane.f32.xlu1 %v912_v63  ;;  %868 = vadd.xlane.f32.xlu0 %v867_v2  ;;  %v606_v12 = vpop.f32.mrb[30].mxu0  ;;  %v685_v13 = vadd.f32 %v684_v10, %v4525_v39  ;;  %v870_v14 = vadd.f32 %v794_v0, %v793_v62  ;;  %v686_v15 = vpop.f32.mrb[30].mxu1  ;;  %v4667_v52 = vsub.s32 2, %v4510_v34 }
 0x189   : > { %v719_v16 = vmax.f32 %v603_v5, 0.0  ;;  %v607_v17 = vadd.f32 %v606_v12, %v4522_v38  ;;  %v751_v18 = vmax.f32 %v683_v9, 0.0  ;;  %v608_v19 = vpop.f32.mrb[31].mxu0  ;;  %v687_v20 = vadd.f32 %v686_v15, %v4522_v38  ;;  %v688_v21 = vpop.f32.mrb[31].mxu1 }
 0x18a   : > { %v720_v22 = vmax.f32 %v605_v11, 0.0  ;;  %v609_v23 = vadd.f32 %v608_v19, %v4525_v39  ;;  %v752_v24 = vmax.f32 %v685_v13, 0.0  ;;  %v689_v25 = vadd.f32 %v688_v21, %v4525_v39 }
 0x18b   : > { %v795_v26 = vmul.f32 %v4533_v46, %v719_v16  ;;  %v721_v27 = vmax.f32 %v607_v17, 0.0  ;;  %v827_v28 = vmul.f32 %v4533_v46, %v751_v18  ;;  %v753_v29 = vmax.f32 %v687_v20, 0.0 }
 0x18c   : > { %v796_v30 = vmul.f32 %v4538_v51, %v720_v22  ;;  %v722_v31 = vmax.f32 %v609_v23, 0.0  ;;  %v828_v32 = vmul.f32 %v4538_v51, %v752_v24  ;;  %871 = vadd.xlane.f32.xlu1 %v870_v14  ;;  %916 = vadd.xlane.f32.xlu0 %v915_v4  ;;  %v754_v38 = vmax.f32 %v689_v25, 0.0 }
 0x18d   : > { %v797_v36 = vmul.f32 %v4533_v46, %v721_v27  ;;  %v829_v40 = vmul.f32 %v4533_v46, %v753_v29  ;;  %v918_v41 = vadd.f32 %v826_v8, %v825_v6  ;;  %v2023_v46 = vunpack.c.0.s8 %v2022_v49 }
 0x18e   : > { %v798_v39 = vmul.f32 %v4538_v51, %v722_v31  ;;  %v830_v42 = vmul.f32 %v4538_v51, %v754_v38  ;;  %v873_v43 = vadd.f32 %v796_v30, %v795_v26  ;;  %v921_v44 = vadd.f32 %v828_v32, %v827_v28 }
 0x18f   : > { %v4670_v51 = vsub.s32 3, %v4510_v34  ;;  %v4673_v54 = vsub.s32 4, %v4510_v34  ;;  %v4676_v55 = vsub.s32 5, %v4510_v34  ;;  %v4679_v56 = vsub.s32 6, %v4510_v34 }
 0x190   : > { %919 = vadd.xlane.f32.xlu1 %v918_v41  ;;  %874 = vadd.xlane.f32.xlu0 %v873_v43  ;;  %v876_v45 = vadd.f32 %v798_v39, %v797_v36  ;;  %v924_v47 = vadd.f32 %v830_v42, %v829_v40  ;;  %v4683_v58 = vsub.s32 7, %v4510_v34  ;;  %v4686_v60 = vsub.s32 %v2023_v46, %v4510_v34 }
 0x194   : > { %877 = vadd.xlane.f32.xlu1 %v876_v45  ;;  %922 = vadd.xlane.f32.xlu0 %v921_v44 }
 0x198   : > { %925 = vadd.xlane.f32.xlu1 %v924_v47 }
 0x1e5   : > { %v833_v53 = vpop.xlane.xlu0 %832 }
 0x1e6   : > { %v929_v57 = vadd.f32 %v4664_v50, %v833_v53 }
 0x1e7   : > { %v884_v59 = vpop.xlane.xlu1 %883 }
 0x1e8   : > { %v946_v61 = vadd.f32 %v4664_v50, %v884_v59  ;;  %v996_v62 = vrot.slane %v929_v57, %v4513_v35  ;;  %v1000_v63 = vrot.slane %v929_v57, %v4519_v37  ;;  %v1004_v0 = vrot.slane %v929_v57, %v4667_v52 }
 0x1e9   : > { %v881_v1 = vpop.xlane.xlu0 %880  ;;  %v1008_v2 = vrot.slane %v929_v57, %v4670_v51  ;;  %v1012_v3 = vrot.slane %v929_v57, %v4673_v54  ;;  %v1016_v4 = vrot.slane %v929_v57, %v4676_v55  ;;  %v1020_v5 = vrot.slane %v929_v57, %v4679_v56 }
 0x1ea   : > { %v945_v6 = vadd.f32 %v4664_v50, %v881_v1  ;;  %v1024_v7 = vrot.slane %v929_v57, %v4683_v58  ;;  %v2017_v8 = vcombine.low %v996_v62, %v1000_v63  ;;  %v1540_v9 = vrot.slane %v946_v61, %v4513_v35 }
 0x1eb   : > { %v2018_v10 = vcombine.low %v1004_v0, %v1008_v2  ;;  %v2019_v11 = vcombine.low %v1012_v3, %v1016_v4  ;;  %v1544_v12 = vrot.slane %v946_v61, %v4519_v37  ;;  %v1548_v13 = vrot.slane %v946_v61, %v4667_v52 }
 0x1ec   : > { %v2020_v14 = vcombine.low %v1020_v5, %v1024_v7  ;;  %v2027_v15 = vrot.slane %v2017_v8, %v4686_v60  ;;  %v1552_v16 = vrot.slane %v946_v61, %v4670_v51  ;;  %v1556_v17 = vrot.slane %v946_v61, %v4673_v54 }
 0x1ed   : > { %v839_v18 = vpop.xlane.xlu1 %838  ;;  %v836_v19 = vpop.xlane.xlu0 %835  ;;  %v2034_v20 = vrot.slane %v2018_v10, %v4686_v60  ;;  %v2041_v21 = vrot.slane %v2019_v11, %v4686_v60  ;;  %v1560_v22 = vrot.slane %v946_v61, %v4676_v55  ;;  %v1564_v23 = vrot.slane %v946_v61, %v4679_v56 }
 0x1ee   : > { %v4709_v24 = vadd.f32 %v4664_v50, %v839_v18  ;;  %v4712_v25 = vadd.f32 %v4664_v50, %v836_v19  ;;  %v2048_v26 = vrot.slane %v2020_v14, %v4686_v60  ;;  %v1568_v27 = vrot.slane %v946_v61, %v4683_v58 }
 0x1ef   : > { %v2049_v28 = vcombine.low %v2027_v15, %v2034_v20  ;;  %v2850_v29 = vcombine.low %v1540_v9, %v1544_v12  ;;  %v2851_v30 = vcombine.low %v1548_v13, %v1552_v16  ;;  %v2852_v31 = vcombine.low %v1556_v17, %v1560_v22 }
 0x1f0   : > { %v2050_v32 = vcombine.low %v2041_v21, %v2048_v26  ;;  %v2853_v38 = vcombine.low %v1564_v23, %v1568_v27  ;;  %v1508_v36 = vrot.slane %v945_v6, %v4513_v35  ;;  %v1512_v40 = vrot.slane %v945_v6, %v4519_v37 }
 0x1f1   : > { %v842_v41 = vpop.xlane.xlu1 %841  ;;  %v887_v39 = vpop.xlane.xlu0 %886  ;;  %v2057_v42 = vrot.slane %v2049_v28, %v4686_v60  ;;  %v2860_v43 = vrot.slane %v2850_v29, %v4686_v60  ;;  %v2867_v44 = vrot.slane %v2851_v30, %v4686_v60  ;;  %v2874_v45 = vrot.slane %v2852_v31, %v4686_v60 }
 0x1f2   : > { %v4723_v47 = vadd.f32 %v4664_v50, %v842_v41  ;;  %v4726_v48 = vadd.f32 %v4664_v50, %v887_v39  ;;  %v2064_v49 = vrot.slane %v2050_v32, %v4686_v60  ;;  %v2881_v46 = vrot.slane %v2853_v38, %v4686_v60 }
 0x1f3   : > { %v2882_v53 = vcombine.low %v2860_v43, %v2867_v44  ;;  %v1516_v57 = vrot.slane %v945_v6, %v4667_v52  ;;  %v1520_v59 = vrot.slane %v945_v6, %v4670_v51  ;;  %v1524_v61 = vrot.slane %v945_v6, %v4673_v54 }
 0x1f4   : > { %v2065_v62 = vcombine.low %v2057_v42, %v2064_v49  ;;  %v2883_v63 = vcombine.low %v2874_v45, %v2881_v46  ;;  %v1528_v0 = vrot.slane %v945_v6, %v4676_v55  ;;  %v1532_v1 = vrot.slane %v945_v6, %v4679_v56 }
 0x1f5   : > { %v890_v2 = vpop.xlane.xlu1 %889  ;;  %v845_v3 = vpop.xlane.xlu0 %844  ;;  %v2890_v4 = vrot.slane %v2882_v53, %v4686_v60  ;;  %v1536_v5 = vrot.slane %v945_v6, %v4683_v58  ;;  %v2801_v7 = vcombine.low %v1508_v36, %v1512_v40  ;;  %v2802_v8 = vcombine.low %v1516_v57, %v1520_v59 }
 0x1f6   : > { %3586 = vperm.xlu0 %4116, %v2065_v62   ;;  %v4738_v9 = vadd.f32 %v4664_v50, %v890_v2  ;;  %v4741_v10 = vadd.f32 %v4664_v50, %v845_v3  ;;  %v2897_v11 = vrot.slane %v2883_v63, %v4686_v60  ;;  %v2803_v12 = vcombine.low %v1524_v61, %v1528_v0 }
 0x1f7   : > { %v2804_v13 = vcombine.low %v1532_v1, %v1536_v5  ;;  %v2811_v14 = vrot.slane %v2801_v7, %v4686_v60  ;;  %v2818_v15 = vrot.slane %v2802_v8, %v4686_v60  ;;  %v1028_v6 = vrot.slane %v4712_v25, %v4513_v35 }
 0x1f8   : > { %v2898_v16 = vcombine.low %v2890_v4, %v2897_v11  ;;  %v2825_v17 = vrot.slane %v2803_v12, %v4686_v60  ;;  %v1032_v18 = vrot.slane %v4712_v25, %v4519_v37  ;;  %v1036_v19 = vrot.slane %v4712_v25, %v4667_v52 }
 0x1f9   : > { %v2832_v20 = vrot.slane %v2804_v13, %v4686_v60  ;;  %v2833_v21 = vcombine.low %v2811_v14, %v2818_v15  ;;  %v848_v22 = vpop.xlane.xlu1 %847  ;;  %v893_v23 = vpop.xlane.xlu0 %892  ;;  %v1040_v26 = vrot.slane %v4712_v25, %v4670_v51  ;;  %v1044_v27 = vrot.slane %v4712_v25, %v4673_v54 }
 0x1fa   : > { %3637 = vperm.xlu0 %4116, %v2898_v16   ;;  %v4759_v28 = vadd.f32 %v4664_v50, %v848_v22  ;;  %v4762_v29 = vadd.f32 %v4664_v50, %v893_v23  ;;  %v1048_v30 = vrot.slane %v4712_v25, %v4676_v55  ;;  %v1052_v31 = vrot.slane %v4712_v25, %v4679_v56 }
 0x1fb   : > { %v2834_v32 = vcombine.low %v2825_v17, %v2832_v20  ;;  %v2841_v38 = vrot.slane %v2833_v21, %v4686_v60  ;;  %v1056_v36 = vrot.slane %v4712_v25, %v4683_v58  ;;  %v2066_v40 = vcombine.low %v1028_v6, %v1032_v18 }
 0x1fc   : > { %v2067_v41 = vcombine.low %v1036_v19, %v1040_v26  ;;  %v2068_v39 = vcombine.low %v1044_v27, %v1048_v30  ;;  %v1060_v42 = vrot.slane %v4709_v24, %v4513_v35  ;;  %v1064_v43 = vrot.slane %v4709_v24, %v4519_v37 }
 0x1fd   : > { %v2848_v44 = vrot.slane %v2834_v32, %v4686_v60  ;;  %v2069_v45 = vcombine.low %v1052_v31, %v1056_v36  ;;  %v2076_v49 = vrot.slane %v2066_v40, %v4686_v60  ;;  %v896_v46 = vpop.xlane.xlu1 %895  ;;  %v851_v53 = vpop.xlane.xlu0 %850  ;;  %v1068_v57 = vrot.slane %v4709_v24, %v4667_v52 }
 0x1fe   : > { %v2083_v25 = vrot.slane %v2067_v41, %v4686_v60  ;;  %v2090_v59 = vrot.slane %v2068_v39, %v4686_v60  ;;  %v4782_v61 = vadd.f32 %v4664_v50, %v896_v46  ;;  %v4785_v62 = vadd.f32 %v4664_v50, %v851_v53 }
 0x1ff   : > { %v2849_v63 = vcombine.low %v2841_v38, %v2848_v44  ;;  %v2097_v0 = vrot.slane %v2069_v45, %v4686_v60  ;;  %v1072_v1 = vrot.slane %v4709_v24, %v4670_v51  ;;  %v1076_v2 = vrot.slane %v4709_v24, %v4673_v54 }
 0x200   : > { %v2098_v3 = vcombine.low %v2076_v49, %v2083_v25  ;;  %v1080_v4 = vrot.slane %v4709_v24, %v4676_v55  ;;  %v1084_v5 = vrot.slane %v4709_v24, %v4679_v56  ;;  %v1088_v7 = vrot.slane %v4709_v24, %v4683_v58 }
 0x201   : > { %3634 = vperm.xlu1 %4117, %v2849_v63   ;;  %v2099_v8 = vcombine.low %v2090_v59, %v2097_v0  ;;  %v2115_v11 = vcombine.low %v1060_v42, %v1064_v43  ;;  %v2116_v12 = vcombine.low %v1068_v57, %v1072_v1  ;;  %v854_v13 = vpop.xlane.xlu1 %853  ;;  %v1604_v14 = vrot.slane %v4738_v9, %v4513_v35  ;;  %v899_v18 = vpop.xlane.xlu0 %898 }
 0x202   : > { %v2106_v15 = vrot.slane %v2098_v3, %v4686_v60  ;;  %v2117_v6 = vcombine.low %v1076_v2, %v1080_v4  ;;  %v2118_v16 = vcombine.low %v1084_v5, %v1088_v7  ;;  %v4802_v17 = vadd.f32 %v4664_v50, %v854_v13 }
 0x203   : > { %v2113_v19 = vrot.slane %v2099_v8, %v4686_v60  ;;  %v2125_v24 = vrot.slane %v2115_v11, %v4686_v60  ;;  %v2132_v20 = vrot.slane %v2116_v12, %v4686_v60  ;;  %v4808_v21 = vadd.f32 %v4664_v50, %v899_v18 }
 0x204   : > { %v2139_v22 = vrot.slane %v2117_v6, %v4686_v60  ;;  %v2146_v23 = vrot.slane %v2118_v16, %v4686_v60  ;;  %v1608_v26 = vrot.slane %v4738_v9, %v4519_v37  ;;  %v1612_v27 = vrot.slane %v4738_v9, %v4667_v52 }
 0x205   : > { %v2114_v30 = vcombine.low %v2106_v15, %v2113_v19  ;;  %v2147_v31 = vcombine.low %v2125_v24, %v2132_v20  ;;  %v1616_v32 = vrot.slane %v4738_v9, %v4670_v51  ;;  %v1620_v38 = vrot.slane %v4738_v9, %v4673_v54  ;;  %v902_v0 = vpop.xlane.xlu1 %901  ;;  %v857_v6 = vpop.xlane.xlu0 %856 }
 0x206   : > { %v2148_v36 = vcombine.low %v2139_v22, %v2146_v23  ;;  %v1624_v40 = vrot.slane %v4738_v9, %v4676_v55  ;;  %v1628_v41 = vrot.slane %v4738_v9, %v4679_v56  ;;  %v1632_v39 = vrot.slane %v4738_v9, %v4683_v58 }
 0x207   : > { %3589 = vperm.xlu1 %4117, %v2114_v30   ;;  %v2155_v42 = vrot.slane %v2147_v31, %v4686_v60  ;;  %v2948_v43 = vcombine.low %v1604_v14, %v1608_v26  ;;  %v2949_v44 = vcombine.low %v1612_v27, %v1616_v32  ;;  %v1572_v45 = vrot.slane %v4726_v48, %v4513_v35 }
 0x208   : > { %v2162_v49 = vrot.slane %v2148_v36, %v4686_v60  ;;  %v2950_v46 = vcombine.low %v1620_v38, %v1624_v40  ;;  %v2951_v53 = vcombine.low %v1628_v41, %v1632_v39  ;;  %v1576_v57 = vrot.slane %v4726_v48, %v4519_v37 }
 0x209   : > { %v2958_v25 = vrot.slane %v2948_v43, %v4686_v60  ;;  %v2965_v59 = vrot.slane %v2949_v44, %v4686_v60  ;;  %v1580_v9 = vrot.slane %v4726_v48, %v4667_v52  ;;  %v1584_v63 = vrot.slane %v4726_v48, %v4670_v51  ;;  %v860_v32 = vpop.xlane.xlu1 %859 }
 0x20a   : > { %v2163_v1 = vcombine.low %v2155_v42, %v2162_v49  ;;  %v2972_v2 = vrot.slane %v2950_v46, %v4686_v60  ;;  %v2979_v3 = vrot.slane %v2951_v53, %v4686_v60  ;;  %v1588_v4 = vrot.slane %v4726_v48, %v4673_v54 }
 0x20b   : > { %v2980_v5 = vcombine.low %v2958_v25, %v2965_v59  ;;  %v1592_v7 = vrot.slane %v4726_v48, %v4676_v55  ;;  %v1596_v8 = vrot.slane %v4726_v48, %v4679_v56  ;;  %v1600_v11 = vrot.slane %v4726_v48, %v4683_v58 }
 0x20c   : > { %3592 = vperm.xlu1 %4117, %v2163_v1   ;;  %v2981_v12 = vcombine.low %v2972_v2, %v2979_v3  ;;  %v2899_v13 = vcombine.low %v1572_v45, %v1576_v57  ;;  %v2900_v14 = vcombine.low %v1580_v9, %v1584_v63  ;;  %v4849_v15 = vadd.f32 %v4664_v50, %v902_v0  ;;  %v905_v57 = vpop.xlane.xlu0 %904 }
 0x20d   : > { %v2988_v16 = vrot.slane %v2980_v5, %v4686_v60  ;;  %v2901_v18 = vcombine.low %v1588_v4, %v1592_v7  ;;  %v2902_v19 = vcombine.low %v1596_v8, %v1600_v11  ;;  %v4853_v24 = vadd.f32 %v4664_v50, %v857_v6  ;;  %v908_v8 = vpop.xlane.xlu1 %907 }
 0x20e   : > { %v2995_v20 = vrot.slane %v2981_v12, %v4686_v60  ;;  %v2909_v22 = vrot.slane %v2899_v13, %v4686_v60  ;;  %v2916_v48 = vrot.slane %v2900_v14, %v4686_v60  ;;  %v1092_v23 = vrot.slane %v4723_v47, %v4513_v35 }
 0x20f   : > { %v2923_v26 = vrot.slane %v2901_v18, %v4686_v60  ;;  %v2930_v27 = vrot.slane %v2902_v19, %v4686_v60  ;;  %v1096_v30 = vrot.slane %v4723_v47, %v4519_v37  ;;  %v1100_v31 = vrot.slane %v4723_v47, %v4667_v52 }
 0x210   : > { %v2996_v38 = vcombine.low %v2988_v16, %v2995_v20  ;;  %v2931_v36 = vcombine.low %v2909_v22, %v2916_v48  ;;  %v1104_v40 = vrot.slane %v4723_v47, %v4670_v51  ;;  %v1108_v41 = vrot.slane %v4723_v47, %v4673_v54 }
 0x211   : > { %v2932_v39 = vcombine.low %v2923_v26, %v2930_v27  ;;  %v1112_v42 = vrot.slane %v4723_v47, %v4676_v55  ;;  %v1116_v43 = vrot.slane %v4723_v47, %v4679_v56  ;;  %v1120_v44 = vrot.slane %v4723_v47, %v4683_v58  ;;  %v863_v26 = vpop.xlane.xlu0 %862 }
 0x212   : > { %3643 = vperm.xlu0 %4116, %v2996_v38   ;;  %v2939_v45 = vrot.slane %v2931_v36, %v4686_v60  ;;  %v2164_v49 = vcombine.low %v1092_v23, %v1096_v30  ;;  %v2165_v46 = vcombine.low %v1100_v31, %v1104_v40  ;;  %v4878_v53 = vadd.f32 %v4664_v50, %v860_v32 }
 0x213   : > { %v2946_v25 = vrot.slane %v2932_v39, %v4686_v60  ;;  %v2166_v59 = vcombine.low %v1108_v41, %v1112_v42  ;;  %v2167_v9 = vcombine.low %v1116_v43, %v1120_v44  ;;  %v4882_v63 = vadd.f32 %v4664_v50, %v905_v57 }
 0x214   : > { %v2174_v0 = vrot.slane %v2164_v49, %v4686_v60  ;;  %v2181_v47 = vrot.slane %v2165_v46, %v4686_v60  ;;  %v1124_v1 = vrot.slane %v4741_v10, %v4513_v35  ;;  %v1128_v2 = vrot.slane %v4741_v10, %v4519_v37 }
 0x215   : > { %v2947_v3 = vcombine.low %v2939_v45, %v2946_v25  ;;  %v2188_v4 = vrot.slane %v2166_v59, %v4686_v60  ;;  %v2195_v5 = vrot.slane %v2167_v9, %v4686_v60  ;;  %v1132_v7 = vrot.slane %v4741_v10, %v4667_v52 }
 0x216   : > { %v2196_v11 = vcombine.low %v2174_v0, %v2181_v47  ;;  %v1136_v12 = vrot.slane %v4741_v10, %v4670_v51  ;;  %v1140_v13 = vrot.slane %v4741_v10, %v4673_v54  ;;  %v1144_v14 = vrot.slane %v4741_v10, %v4676_v55 }
 0x217   : > { %3640 = vperm.xlu1 %4117, %v2947_v3   ;;  %v2197_v6 = vcombine.low %v2188_v4, %v2195_v5  ;;  %v1148_v16 = vrot.slane %v4741_v10, %v4679_v56  ;;  %v1152_v18 = vrot.slane %v4741_v10, %v4683_v58  ;;  %v2213_v19 = vcombine.low %v1124_v1, %v1128_v2 }
 0x218   : > { %v2204_v20 = vrot.slane %v2196_v11, %v4686_v60  ;;  %v2214_v22 = vcombine.low %v1132_v7, %v1136_v12  ;;  %v2215_v48 = vcombine.low %v1140_v13, %v1144_v14  ;;  %v4906_v23 = vadd.f32 %v4664_v50, %v908_v8 }
 0x219   : > { %v2211_v27 = vrot.slane %v2197_v6, %v4686_v60  ;;  %v2216_v30 = vcombine.low %v1148_v16, %v1152_v18  ;;  %v2223_v31 = vrot.slane %v2213_v19, %v4686_v60  ;;  %v4911_v32 = vadd.f32 %v4664_v50, %v863_v26  ;;  %v911_v18 = vpop.xlane.xlu0 %910  ;;  %v866_v26 = vpop.xlane.xlu1 %865 }
 0x21a   : > { %v2230_v38 = vrot.slane %v2214_v22, %v4686_v60  ;;  %v2237_v10 = vrot.slane %v2215_v48, %v4686_v60  ;;  %v1668_v36 = vrot.slane %v4782_v61, %v4513_v35  ;;  %v1672_v40 = vrot.slane %v4782_v61, %v4519_v37 }
 0x21b   : > { %v2212_v41 = vcombine.low %v2204_v20, %v2211_v27  ;;  %v2244_v39 = vrot.slane %v2216_v30, %v4686_v60  ;;  %v1676_v42 = vrot.slane %v4782_v61, %v4667_v52  ;;  %v1680_v43 = vrot.slane %v4782_v61, %v4670_v51 }
 0x21c   : > { %v2245_v44 = vcombine.low %v2223_v31, %v2230_v38  ;;  %v1684_v45 = vrot.slane %v4782_v61, %v4673_v54  ;;  %v1688_v49 = vrot.slane %v4782_v61, %v4676_v55  ;;  %v1692_v46 = vrot.slane %v4782_v61, %v4679_v56 }
 0x21d   : > { %3595 = vperm.xlu1 %4117, %v2212_v41   ;;  %v2246_v57 = vcombine.low %v2237_v10, %v2244_v39  ;;  %v1696_v25 = vrot.slane %v4782_v61, %v4683_v58  ;;  %v3046_v59 = vcombine.low %v1668_v36, %v1672_v40  ;;  %v3047_v9 = vcombine.low %v1676_v42, %v1680_v43 }
 0x21e   : > { %v2253_v0 = vrot.slane %v2245_v44, %v4686_v60  ;;  %v3048_v47 = vcombine.low %v1684_v45, %v1688_v49  ;;  %v1636_v1 = vrot.slane %v4762_v29, %v4513_v35  ;;  %v1640_v2 = vrot.slane %v4762_v29, %v4519_v37 }
 0x21f   : > { %v2260_v3 = vrot.slane %v2246_v57, %v4686_v60  ;;  %v3049_v4 = vcombine.low %v1692_v46, %v1696_v25  ;;  %v3056_v5 = vrot.slane %v3046_v59, %v4686_v60  ;;  %v3063_v7 = vrot.slane %v3047_v9, %v4686_v60 }
 0x220   : > { %v3070_v61 = vrot.slane %v3048_v47, %v4686_v60  ;;  %v1644_v8 = vrot.slane %v4762_v29, %v4667_v52  ;;  %v1648_v11 = vrot.slane %v4762_v29, %v4670_v51  ;;  %v1652_v12 = vrot.slane %v4762_v29, %v4673_v54 }
 0x221   : > { %v2261_v13 = vcombine.low %v2253_v0, %v2260_v3  ;;  %v3077_v14 = vrot.slane %v3049_v4, %v4686_v60  ;;  %v3078_v6 = vcombine.low %v3056_v5, %v3063_v7  ;;  %v1656_v16 = vrot.slane %v4762_v29, %v4676_v55 }
 0x222   : > { %v1660_v19 = vrot.slane %v4762_v29, %v4679_v56  ;;  %v1664_v20 = vrot.slane %v4762_v29, %v4683_v58  ;;  %v2997_v22 = vcombine.low %v1636_v1, %v1640_v2  ;;  %v2998_v48 = vcombine.low %v1644_v8, %v1648_v11 }
 0x223   : > { %3598 = vperm.xlu1 %4117, %v2261_v13   ;;  %v3079_v27 = vcombine.low %v3070_v61, %v3077_v14  ;;  %v3086_v30 = vrot.slane %v3078_v6, %v4686_v60  ;;  %v2999_v31 = vcombine.low %v1652_v12, %v1656_v16  ;;  %v4956_v38 = vadd.f32 %v4664_v50, %v866_v26  ;;  %v914_v16 = vpop.xlane.xlu1 %913 }
 0x224   : > { %v3000_v10 = vcombine.low %v1660_v19, %v1664_v20  ;;  %v3007_v36 = vrot.slane %v2997_v22, %v4686_v60  ;;  %v3014_v40 = vrot.slane %v2998_v48, %v4686_v60  ;;  %v4961_v41 = vadd.f32 %v4664_v50, %v911_v18 }
 0x225   : > { %v3093_v29 = vrot.slane %v3079_v27, %v4686_v60  ;;  %v3021_v39 = vrot.slane %v2999_v31, %v4686_v60  ;;  %v1732_v42 = vrot.slane %v4849_v15, %v4513_v35  ;;  %v1736_v43 = vrot.slane %v4849_v15, %v4519_v37  ;;  %v869_v31 = vpop.xlane.xlu0 %868 }
 0x226   : > { %v3028_v44 = vrot.slane %v3000_v10, %v4686_v60  ;;  %v3029_v45 = vcombine.low %v3007_v36, %v3014_v40  ;;  %v1740_v49 = vrot.slane %v4849_v15, %v4667_v52  ;;  %v1744_v46 = vrot.slane %v4849_v15, %v4670_v51 }
 0x227   : > { %v3094_v57 = vcombine.low %v3086_v30, %v3093_v29  ;;  %v1748_v25 = vrot.slane %v4849_v15, %v4673_v54  ;;  %v1752_v59 = vrot.slane %v4849_v15, %v4676_v55  ;;  %v1756_v9 = vrot.slane %v4849_v15, %v4679_v56 }
 0x228   : > { %v3030_v0 = vcombine.low %v3021_v39, %v3028_v44  ;;  %v3037_v47 = vrot.slane %v3029_v45, %v4686_v60  ;;  %v1760_v1 = vrot.slane %v4849_v15, %v4683_v58  ;;  %v3144_v2 = vcombine.low %v1732_v42, %v1736_v43 }
 0x229   : > { %3649 = vperm.xlu0 %4116, %v3094_v57   ;;  %v3145_v3 = vcombine.low %v1740_v49, %v1744_v46  ;;  %v3146_v4 = vcombine.low %v1748_v25, %v1752_v59  ;;  %v1156_v5 = vrot.slane %v4759_v28, %v4513_v35  ;;  %v1160_v7 = vrot.slane %v4759_v28, %v4519_v37 }
 0x22a   : > { %v3044_v61 = vrot.slane %v3030_v0, %v4686_v60  ;;  %v3147_v8 = vcombine.low %v1756_v9, %v1760_v1  ;;  %v3154_v11 = vrot.slane %v3144_v2, %v4686_v60  ;;  %v1164_v12 = vrot.slane %v4759_v28, %v4667_v52 }
 0x22b   : > { %v3161_v15 = vrot.slane %v3145_v3, %v4686_v60  ;;  %v3168_v13 = vrot.slane %v3146_v4, %v4686_v60  ;;  %v1168_v14 = vrot.slane %v4759_v28, %v4670_v51  ;;  %v1172_v6 = vrot.slane %v4759_v28, %v4673_v54 }
 0x22c   : > { %v3045_v18 = vcombine.low %v3037_v47, %v3044_v61  ;;  %v3175_v19 = vrot.slane %v3147_v8, %v4686_v60  ;;  %v1176_v20 = vrot.slane %v4759_v28, %v4676_v55  ;;  %v1180_v22 = vrot.slane %v4759_v28, %v4679_v56 }
 0x22d   : > { %v3176_v48 = vcombine.low %v3154_v11, %v3161_v15  ;;  %v1184_v26 = vrot.slane %v4759_v28, %v4683_v58  ;;  %v2262_v27 = vcombine.low %v1156_v5, %v1160_v7  ;;  %v2263_v30 = vcombine.low %v1164_v12, %v1168_v14 }
 0x22e   : > { %3646 = vperm.xlu1 %4117, %v3045_v18   ;;  %v3177_v10 = vcombine.low %v3168_v13, %v3175_v19  ;;  %v2264_v36 = vcombine.low %v1172_v6, %v1176_v20  ;;  %v5005_v40 = vadd.f32 %v4664_v50, %v914_v16  ;;  %v5008_v29 = vadd.f32 %v4664_v50, %v869_v31  ;;  %v917_v20 = vpop.xlane.xlu0 %916 }
 0x22f   : > { %v3184_v39 = vrot.slane %v3176_v48, %v4686_v60  ;;  %v2265_v42 = vcombine.low %v1180_v22, %v1184_v26  ;;  %v2272_v43 = vrot.slane %v2262_v27, %v4686_v60  ;;  %v2279_v44 = vrot.slane %v2263_v30, %v4686_v60 }
 0x230   : > { %v3191_v28 = vrot.slane %v3177_v10, %v4686_v60  ;;  %v2286_v45 = vrot.slane %v2264_v36, %v4686_v60  ;;  %v1284_v49 = vrot.slane %v4878_v53, %v4513_v35  ;;  %v1288_v46 = vrot.slane %v4878_v53, %v4519_v37 }
 0x231   : > { %v2293_v57 = vrot.slane %v2265_v42, %v4686_v60  ;;  %v2294_v25 = vcombine.low %v2272_v43, %v2279_v44  ;;  %v1292_v59 = vrot.slane %v4878_v53, %v4667_v52  ;;  %v1296_v9 = vrot.slane %v4878_v53, %v4670_v51 }
 0x232   : > { %v3192_v0 = vcombine.low %v3184_v39, %v3191_v28  ;;  %v1300_v47 = vrot.slane %v4878_v53, %v4673_v54  ;;  %v1304_v1 = vrot.slane %v4878_v53, %v4676_v55  ;;  %v1308_v2 = vrot.slane %v4878_v53, %v4679_v56  ;;  %v872_v39 = vpop.xlane.xlu1 %871 }
 0x233   : > { %v2295_v3 = vcombine.low %v2286_v45, %v2293_v57  ;;  %v2302_v4 = vrot.slane %v2294_v25, %v4686_v60  ;;  %v1312_v5 = vrot.slane %v4878_v53, %v4683_v58  ;;  %v2458_v7 = vcombine.low %v1284_v49, %v1288_v46 }
 0x234   : > { %3655 = vperm.xlu0 %4116, %v3192_v0   ;;  %v2459_v61 = vcombine.low %v1292_v59, %v1296_v9  ;;  %v2460_v8 = vcombine.low %v1300_v47, %v1304_v1  ;;  %v1188_v11 = vrot.slane %v4785_v62, %v4513_v35  ;;  %v1192_v12 = vrot.slane %v4785_v62, %v4519_v37 }
 0x235   : > { %v2309_v15 = vrot.slane %v2295_v3, %v4686_v60  ;;  %v2461_v13 = vcombine.low %v1308_v2, %v1312_v5  ;;  %v2468_v14 = vrot.slane %v2458_v7, %v4686_v60  ;;  %v1196_v6 = vrot.slane %v4785_v62, %v4667_v52 }
 0x236   : > { %v2475_v53 = vrot.slane %v2459_v61, %v4686_v60  ;;  %v2482_v16 = vrot.slane %v2460_v8, %v4686_v60  ;;  %v1200_v18 = vrot.slane %v4785_v62, %v4670_v51  ;;  %v1204_v19 = vrot.slane %v4785_v62, %v4673_v54 }
 0x237   : > { %v2310_v22 = vcombine.low %v2302_v4, %v2309_v15  ;;  %v2489_v48 = vrot.slane %v2461_v13, %v4686_v60  ;;  %v1208_v26 = vrot.slane %v4785_v62, %v4676_v55  ;;  %v1212_v27 = vrot.slane %v4785_v62, %v4679_v56 }
 0x238   : > { %v2490_v30 = vcombine.low %v2468_v14, %v2475_v53  ;;  %v1216_v31 = vrot.slane %v4785_v62, %v4683_v58  ;;  %v2311_v10 = vcombine.low %v1188_v11, %v1192_v12  ;;  %v2312_v36 = vcombine.low %v1196_v6, %v1200_v18 }
 0x239   : > { %3601 = vperm.xlu1 %4117, %v2310_v22   ;;  %v2491_v42 = vcombine.low %v2482_v16, %v2489_v48  ;;  %v2313_v43 = vcombine.low %v1204_v19, %v1208_v26  ;;  %v5055_v44 = vadd.f32 %v4664_v50, %v872_v39  ;;  %v5058_v28 = vadd.f32 %v4664_v50, %v917_v20  ;;  %v920_v26 = vpop.xlane.xlu1 %919 }
 0x23a   : > { %v2498_v45 = vrot.slane %v2490_v30, %v4686_v60  ;;  %v2314_v49 = vcombine.low %v1212_v27, %v1216_v31  ;;  %v2321_v46 = vrot.slane %v2311_v10, %v4686_v60  ;;  %v2328_v57 = vrot.slane %v2312_v36, %v4686_v60 }
 0x23b   : > { %v2505_v62 = vrot.slane %v2491_v42, %v4686_v60  ;;  %v2335_v25 = vrot.slane %v2313_v43, %v4686_v60  ;;  %v1796_v59 = vrot.slane %v4906_v23, %v4513_v35  ;;  %v1800_v9 = vrot.slane %v4906_v23, %v4519_v37 }
 0x23c   : > { %v2342_v0 = vrot.slane %v2314_v49, %v4686_v60  ;;  %v2343_v47 = vcombine.low %v2321_v46, %v2328_v57  ;;  %v1804_v1 = vrot.slane %v4906_v23, %v4667_v52  ;;  %v1808_v2 = vrot.slane %v4906_v23, %v4670_v51 }
 0x23d   : > { %v2506_v3 = vcombine.low %v2498_v45, %v2505_v62  ;;  %v1812_v4 = vrot.slane %v4906_v23, %v4673_v54  ;;  %v1816_v5 = vrot.slane %v4906_v23, %v4676_v55  ;;  %v1820_v7 = vrot.slane %v4906_v23, %v4679_v56  ;;  %v875_v45 = vpop.xlane.xlu0 %874 }
 0x23e   : > { %v2344_v61 = vcombine.low %v2335_v25, %v2342_v0  ;;  %v2351_v8 = vrot.slane %v2343_v47, %v4686_v60  ;;  %v1824_v11 = vrot.slane %v4906_v23, %v4683_v58  ;;  %v3242_v12 = vcombine.low %v1796_v59, %v1800_v9 }
 0x23f   : > { %3613 = vperm.xlu0 %4116, %v2506_v3   ;;  %v3243_v15 = vcombine.low %v1804_v1, %v1808_v2  ;;  %v3244_v13 = vcombine.low %v1812_v4, %v1816_v5  ;;  %v1700_v14 = vrot.slane %v4808_v21, %v4513_v35  ;;  %v1704_v6 = vrot.slane %v4808_v21, %v4519_v37 }
 0x240   : > { %v2358_v53 = vrot.slane %v2344_v61, %v4686_v60  ;;  %v3245_v16 = vcombine.low %v1820_v7, %v1824_v11  ;;  %v3252_v18 = vrot.slane %v3242_v12, %v4686_v60  ;;  %v1708_v19 = vrot.slane %v4808_v21, %v4667_v52 }
 0x241   : > { %v3259_v23 = vrot.slane %v3243_v15, %v4686_v60  ;;  %v3266_v20 = vrot.slane %v3244_v13, %v4686_v60  ;;  %v1712_v22 = vrot.slane %v4808_v21, %v4670_v51  ;;  %v1716_v48 = vrot.slane %v4808_v21, %v4673_v54 }
 0x242   : > { %v2359_v27 = vcombine.low %v2351_v8, %v2358_v53  ;;  %v3273_v30 = vrot.slane %v3245_v16, %v4686_v60  ;;  %v1720_v31 = vrot.slane %v4808_v21, %v4676_v55  ;;  %v1724_v10 = vrot.slane %v4808_v21, %v4679_v56 }
 0x243   : > { %v3274_v36 = vcombine.low %v3252_v18, %v3259_v23  ;;  %v1728_v39 = vrot.slane %v4808_v21, %v4683_v58  ;;  %v3095_v42 = vcombine.low %v1700_v14, %v1704_v6  ;;  %v3096_v43 = vcombine.low %v1708_v19, %v1712_v22 }
 0x244   : > { %3604 = vperm.xlu1 %4117, %v2359_v27   ;;  %v3275_v49 = vcombine.low %v3266_v20, %v3273_v30  ;;  %v3097_v46 = vcombine.low %v1716_v48, %v1720_v31  ;;  %v5105_v57 = vadd.f32 %v4664_v50, %v920_v26  ;;  %v5108_v62 = vadd.f32 %v4664_v50, %v875_v45  ;;  %v923_v31 = vpop.xlane.xlu0 %922 }
 0x245   : > { %v3282_v25 = vrot.slane %v3274_v36, %v4686_v60  ;;  %v3098_v59 = vcombine.low %v1724_v10, %v1728_v39  ;;  %v3105_v9 = vrot.slane %v3095_v42, %v4686_v60  ;;  %v3112_v0 = vrot.slane %v3096_v43, %v4686_v60 }
 0x246   : > { %v3289_v21 = vrot.slane %v3275_v49, %v4686_v60  ;;  %v3119_v47 = vrot.slane %v3097_v46, %v4686_v60  ;;  %v1220_v1 = vrot.slane %v4802_v17, %v4513_v35  ;;  %v1224_v2 = vrot.slane %v4802_v17, %v4519_v37 }
 0x247   : > { %v3126_v3 = vrot.slane %v3098_v59, %v4686_v60  ;;  %v3127_v4 = vcombine.low %v3105_v9, %v3112_v0  ;;  %v1228_v5 = vrot.slane %v4802_v17, %v4667_v52  ;;  %v1232_v7 = vrot.slane %v4802_v17, %v4670_v51 }
 0x248   : > { %v3290_v61 = vcombine.low %v3282_v25, %v3289_v21  ;;  %v1236_v8 = vrot.slane %v4802_v17, %v4673_v54  ;;  %v1240_v11 = vrot.slane %v4802_v17, %v4676_v55  ;;  %v1244_v12 = vrot.slane %v4802_v17, %v4679_v56  ;;  %v878_v25 = vpop.xlane.xlu1 %877 }
 0x249   : > { %v3128_v15 = vcombine.low %v3119_v47, %v3126_v3  ;;  %v3135_v13 = vrot.slane %v3127_v4, %v4686_v60  ;;  %v1248_v14 = vrot.slane %v4802_v17, %v4683_v58  ;;  %v2360_v6 = vcombine.low %v1220_v1, %v1224_v2 }
 0x24a   : > { %3661 = vperm.xlu0 %4116, %v3290_v61   ;;  %v2361_v53 = vcombine.low %v1228_v5, %v1232_v7  ;;  %v2362_v16 = vcombine.low %v1236_v8, %v1240_v11  ;;  %v1828_v18 = vrot.slane %v4961_v41, %v4513_v35  ;;  %v1832_v19 = vrot.slane %v4961_v41, %v4519_v37 }
 0x24b   : > { %v3142_v23 = vrot.slane %v3128_v15, %v4686_v60  ;;  %v2363_v20 = vcombine.low %v1244_v12, %v1248_v14  ;;  %v2370_v22 = vrot.slane %v2360_v6, %v4686_v60  ;;  %v1836_v48 = vrot.slane %v4961_v41, %v4667_v52 }
 0x24c   : > { %v2377_v17 = vrot.slane %v2361_v53, %v4686_v60  ;;  %v2384_v26 = vrot.slane %v2362_v16, %v4686_v60  ;;  %v1840_v27 = vrot.slane %v4961_v41, %v4670_v51  ;;  %v1844_v30 = vrot.slane %v4961_v41, %v4673_v54 }
 0x24d   : > { %v3143_v10 = vcombine.low %v3135_v13, %v3142_v23  ;;  %v2391_v36 = vrot.slane %v2363_v20, %v4686_v60  ;;  %v1848_v39 = vrot.slane %v4961_v41, %v4676_v55  ;;  %v1852_v42 = vrot.slane %v4961_v41, %v4679_v56 }
 0x24e   : > { %v2392_v43 = vcombine.low %v2370_v22, %v2377_v17  ;;  %v1856_v45 = vrot.slane %v4961_v41, %v4683_v58  ;;  %v3291_v49 = vcombine.low %v1828_v18, %v1832_v19  ;;  %v3292_v46 = vcombine.low %v1836_v48, %v1840_v27 }
 0x24f   : > { %3652 = vperm.xlu1 %4117, %v3143_v10   ;;  %v2393_v59 = vcombine.low %v2384_v26, %v2391_v36  ;;  %v3293_v9 = vcombine.low %v1844_v30, %v1848_v39  ;;  %v5155_v0 = vadd.f32 %v4664_v50, %v878_v25  ;;  %v5158_v21 = vadd.f32 %v4664_v50, %v923_v31  ;;  %v926_v39 = vpop.xlane.xlu1 %925 }
 0x250   : > { %v2400_v47 = vrot.slane %v2392_v43, %v4686_v60  ;;  %v3294_v1 = vcombine.low %v1852_v42, %v1856_v45  ;;  %v3301_v2 = vrot.slane %v3291_v49, %v4686_v60  ;;  %v3308_v3 = vrot.slane %v3292_v46, %v4686_v60 }
 0x251   : > { %v2407_v41 = vrot.slane %v2393_v59, %v4686_v60  ;;  %v3315_v4 = vrot.slane %v3293_v9, %v4686_v60  ;;  %v1252_v5 = vrot.slane %v4853_v24, %v4513_v35  ;;  %v1256_v7 = vrot.slane %v4853_v24, %v4519_v37 }
 0x252   : > { %v3322_v61 = vrot.slane %v3294_v1, %v4686_v60  ;;  %v3323_v8 = vcombine.low %v3301_v2, %v3308_v3  ;;  %v1260_v11 = vrot.slane %v4853_v24, %v4667_v52  ;;  %v1264_v12 = vrot.slane %v4853_v24, %v4670_v51 }
 0x253   : > { %v2408_v15 = vcombine.low %v2400_v47, %v2407_v41  ;;  %v1268_v13 = vrot.slane %v4853_v24, %v4673_v54  ;;  %v1272_v14 = vrot.slane %v4853_v24, %v4676_v55  ;;  %v1276_v6 = vrot.slane %v4853_v24, %v4679_v56 }
 0x254   : > { %v3324_v53 = vcombine.low %v3315_v4, %v3322_v61  ;;  %v3331_v16 = vrot.slane %v3323_v8, %v4686_v60  ;;  %v1280_v18 = vrot.slane %v4853_v24, %v4683_v58  ;;  %v2409_v19 = vcombine.low %v1252_v5, %v1256_v7 }
 0x255   : > { %3607 = vperm.xlu1 %4117, %v2408_v15   ;;  %v2410_v23 = vcombine.low %v1260_v11, %v1264_v12  ;;  %v2411_v20 = vcombine.low %v1268_v13, %v1272_v14  ;;  %v1860_v22 = vrot.slane %v5005_v40, %v4513_v35  ;;  %v1864_v48 = vrot.slane %v5005_v40, %v4519_v37 }
 0x256   : > { %v3338_v17 = vrot.slane %v3324_v53, %v4686_v60  ;;  %v2412_v26 = vcombine.low %v1276_v6, %v1280_v18  ;;  %v2419_v27 = vrot.slane %v2409_v19, %v4686_v60  ;;  %v1868_v30 = vrot.slane %v5005_v40, %v4667_v52 }
 0x257   : > { %v2426_v24 = vrot.slane %v2410_v23, %v4686_v60  ;;  %v2433_v31 = vrot.slane %v2411_v20, %v4686_v60  ;;  %v1872_v10 = vrot.slane %v5005_v40, %v4670_v51  ;;  %v1876_v36 = vrot.slane %v5005_v40, %v4673_v54 }
 0x258   : > { %v3339_v42 = vcombine.low %v3331_v16, %v3338_v17  ;;  %v2440_v43 = vrot.slane %v2412_v26, %v4686_v60  ;;  %v1880_v45 = vrot.slane %v5005_v40, %v4676_v55  ;;  %v1884_v49 = vrot.slane %v5005_v40, %v4679_v56 }
 0x259   : > { %v2441_v46 = vcombine.low %v2419_v27, %v2426_v24  ;;  %v1888_v25 = vrot.slane %v5005_v40, %v4683_v58  ;;  %v3340_v59 = vcombine.low %v1860_v22, %v1864_v48  ;;  %v3341_v9 = vcombine.low %v1868_v30, %v1872_v10 }
 0x25a   : > { %3664 = vperm.xlu0 %4116, %v3339_v42   ;;  %v2442_v47 = vcombine.low %v2433_v31, %v2440_v43  ;;  %v3342_v1 = vcombine.low %v1876_v36, %v1880_v45  ;;  %v5205_v2 = vadd.f32 %v4664_v50, %v926_v39  ;;  %v1764_v3 = vrot.slane %v4882_v63, %v4513_v35 }
 0x25b   : > { %v2449_v41 = vrot.slane %v2441_v46, %v4686_v60  ;;  %v3343_v4 = vcombine.low %v1884_v49, %v1888_v25  ;;  %v3350_v5 = vrot.slane %v3340_v59, %v4686_v60  ;;  %v3357_v7 = vrot.slane %v3341_v9, %v4686_v60 }
 0x25c   : > { %v2456_v40 = vrot.slane %v2442_v47, %v4686_v60  ;;  %v3364_v61 = vrot.slane %v3342_v1, %v4686_v60  ;;  %v1768_v8 = vrot.slane %v4882_v63, %v4519_v37  ;;  %v1772_v50 = vrot.slane %v4882_v63, %v4667_v52 }
 0x25d   : > { %v3371_v11 = vrot.slane %v3343_v4, %v4686_v60  ;;  %v3372_v12 = vcombine.low %v3350_v5, %v3357_v7  ;;  %v1776_v15 = vrot.slane %v4882_v63, %v4670_v51  ;;  %v1780_v13 = vrot.slane %v4882_v63, %v4673_v54 }
 0x25e   : > { %v2457_v14 = vcombine.low %v2449_v41, %v2456_v40  ;;  %v1784_v6 = vrot.slane %v4882_v63, %v4676_v55  ;;  %v1788_v53 = vrot.slane %v4882_v63, %v4679_v56  ;;  %v1792_v16 = vrot.slane %v4882_v63, %v4683_v58 }
 0x25f   : > { %v3373_v18 = vcombine.low %v3364_v61, %v3371_v11  ;;  %v3380_v19 = vrot.slane %v3372_v12, %v4686_v60  ;;  %v3193_v23 = vcombine.low %v1764_v3, %v1768_v8  ;;  %v3194_v20 = vcombine.low %v1772_v50, %v1776_v15 }
 0x260   : > { %3610 = vperm.xlu1 %4117, %v2457_v14   ;;  %v3195_v22 = vcombine.low %v1780_v13, %v1784_v6  ;;  %v3196_v48 = vcombine.low %v1788_v53, %v1792_v16  ;;  %v1892_v17 = vrot.slane %v5058_v28, %v4513_v35  ;;  %v1896_v26 = vrot.slane %v5058_v28, %v4519_v37 }
 0x261   : > { %v3387_v27 = vrot.slane %v3373_v18, %v4686_v60  ;;  %v3203_v30 = vrot.slane %v3193_v23, %v4686_v60  ;;  %v3210_v63 = vrot.slane %v3194_v20, %v4686_v60  ;;  %v1900_v24 = vrot.slane %v5058_v28, %v4667_v52 }
 0x262   : > { %v3217_v31 = vrot.slane %v3195_v22, %v4686_v60  ;;  %v3224_v10 = vrot.slane %v3196_v48, %v4686_v60  ;;  %v1904_v36 = vrot.slane %v5058_v28, %v4670_v51  ;;  %v1908_v39 = vrot.slane %v5058_v28, %v4673_v54 }
 0x263   : > { %v3388_v42 = vcombine.low %v3380_v19, %v3387_v27  ;;  %v3225_v43 = vcombine.low %v3203_v30, %v3210_v63  ;;  %v1912_v45 = vrot.slane %v5058_v28, %v4676_v55  ;;  %v1916_v49 = vrot.slane %v5058_v28, %v4679_v56 }
 0x264   : > { %v3226_v46 = vcombine.low %v3217_v31, %v3224_v10  ;;  %v1920_v25 = vrot.slane %v5058_v28, %v4683_v58  ;;  %v3389_v59 = vcombine.low %v1892_v17, %v1896_v26  ;;  %v3390_v9 = vcombine.low %v1900_v24, %v1904_v36 }
 0x265   : > { %3667 = vperm.xlu0 %4116, %v3388_v42   ;;  %v3233_v47 = vrot.slane %v3225_v43, %v4686_v60  ;;  %v3391_v1 = vcombine.low %v1908_v39, %v1912_v45  ;;  %v1316_v3 = vrot.slane %v4911_v32, %v4513_v35  ;;  %v1320_v41 = vrot.slane %v4911_v32, %v4519_v37 }
 0x266   : > { %v3240_v4 = vrot.slane %v3226_v46, %v4686_v60  ;;  %v3392_v5 = vcombine.low %v1916_v49, %v1920_v25  ;;  %v3399_v7 = vrot.slane %v3389_v59, %v4686_v60  ;;  %v3406_v40 = vrot.slane %v3390_v9, %v4686_v60 }
 0x267   : > { %v3413_v28 = vrot.slane %v3391_v1, %v4686_v60  ;;  %v1324_v61 = vrot.slane %v4911_v32, %v4667_v52  ;;  %v1328_v8 = vrot.slane %v4911_v32, %v4670_v51  ;;  %v1332_v50 = vrot.slane %v4911_v32, %v4673_v54 }
 0x268   : > { %v3241_v11 = vcombine.low %v3233_v47, %v3240_v4  ;;  %v3420_v12 = vrot.slane %v3392_v5, %v4686_v60  ;;  %v3421_v15 = vcombine.low %v3399_v7, %v3406_v40  ;;  %v1336_v13 = vrot.slane %v4911_v32, %v4676_v55 }
 0x269   : > { %v1340_v14 = vrot.slane %v4911_v32, %v4679_v56  ;;  %v1344_v6 = vrot.slane %v4911_v32, %v4683_v58  ;;  %v2507_v53 = vcombine.low %v1316_v3, %v1320_v41  ;;  %v2508_v16 = vcombine.low %v1324_v61, %v1328_v8 }
 0x26a   : > { %3658 = vperm.xlu1 %4117, %v3241_v11   ;;  %v3422_v18 = vcombine.low %v3413_v28, %v3420_v12  ;;  %v3429_v19 = vrot.slane %v3421_v15, %v4686_v60  ;;  %v2509_v23 = vcombine.low %v1332_v50, %v1336_v13  ;;  %v1924_v20 = vrot.slane %v5105_v57, %v4513_v35 }
 0x26b   : > { %v2510_v22 = vcombine.low %v1340_v14, %v1344_v6  ;;  %v2517_v48 = vrot.slane %v2507_v53, %v4686_v60  ;;  %v2524_v17 = vrot.slane %v2508_v16, %v4686_v60  ;;  %v1928_v26 = vrot.slane %v5105_v57, %v4519_v37 }
 0x26c   : > { %v3436_v32 = vrot.slane %v3422_v18, %v4686_v60  ;;  %v2531_v27 = vrot.slane %v2509_v23, %v4686_v60  ;;  %v1932_v30 = vrot.slane %v5105_v57, %v4667_v52  ;;  %v1936_v63 = vrot.slane %v5105_v57, %v4670_v51 }
 0x26d   : > { %v2538_v24 = vrot.slane %v2510_v22, %v4686_v60  ;;  %v2539_v31 = vcombine.low %v2517_v48, %v2524_v17  ;;  %v1940_v10 = vrot.slane %v5105_v57, %v4673_v54  ;;  %v1944_v36 = vrot.slane %v5105_v57, %v4676_v55 }
 0x26e   : > { %v3437_v39 = vcombine.low %v3429_v19, %v3436_v32  ;;  %v1948_v42 = vrot.slane %v5105_v57, %v4679_v56  ;;  %v1952_v43 = vrot.slane %v5105_v57, %v4683_v58  ;;  %v3438_v45 = vcombine.low %v1924_v20, %v1928_v26 }
 0x26f   : > { %v2540_v49 = vcombine.low %v2531_v27, %v2538_v24  ;;  %v2547_v46 = vrot.slane %v2539_v31, %v4686_v60  ;;  %v3439_v25 = vcombine.low %v1932_v30, %v1936_v63  ;;  %v3440_v59 = vcombine.low %v1940_v10, %v1944_v36 }
 0x270   : > { %3670 = vperm.xlu0 %4116, %v3437_v39   ;;  %v3441_v9 = vcombine.low %v1948_v42, %v1952_v43  ;;  %v3448_v47 = vrot.slane %v3438_v45, %v4686_v60  ;;  %v1348_v1 = vrot.slane %v4956_v38, %v4513_v35  ;;  %v1352_v3 = vrot.slane %v4956_v38, %v4519_v37 }
 0x271   : > { %v2554_v41 = vrot.slane %v2540_v49, %v4686_v60  ;;  %v3455_v57 = vrot.slane %v3439_v25, %v4686_v60  ;;  %v3462_v4 = vrot.slane %v3440_v59, %v4686_v60  ;;  %v1356_v5 = vrot.slane %v4956_v38, %v4667_v52 }
 0x272   : > { %v3469_v7 = vrot.slane %v3441_v9, %v4686_v60  ;;  %v1360_v40 = vrot.slane %v4956_v38, %v4670_v51  ;;  %v1364_v28 = vrot.slane %v4956_v38, %v4673_v54  ;;  %v1368_v61 = vrot.slane %v4956_v38, %v4676_v55 }
 0x273   : > { %v2555_v8 = vcombine.low %v2547_v46, %v2554_v41  ;;  %v3470_v50 = vcombine.low %v3448_v47, %v3455_v57  ;;  %v1372_v11 = vrot.slane %v4956_v38, %v4679_v56  ;;  %v1376_v12 = vrot.slane %v4956_v38, %v4683_v58 }
 0x274   : > { %v3471_v15 = vcombine.low %v3462_v4, %v3469_v7  ;;  %v2556_v13 = vcombine.low %v1348_v1, %v1352_v3  ;;  %v2557_v14 = vcombine.low %v1356_v5, %v1360_v40  ;;  %v2558_v6 = vcombine.low %v1364_v28, %v1368_v61 }
 0x275   : > { %3616 = vperm.xlu1 %4117, %v2555_v8   ;;  %v3478_v53 = vrot.slane %v3470_v50, %v4686_v60  ;;  %v2559_v16 = vcombine.low %v1372_v11, %v1376_v12  ;;  %v1956_v18 = vrot.slane %v5158_v21, %v4513_v35  ;;  %v1960_v19 = vrot.slane %v5158_v21, %v4519_v37 }
 0x276   : > { %v3485_v23 = vrot.slane %v3471_v15, %v4686_v60  ;;  %v2566_v20 = vrot.slane %v2556_v13, %v4686_v60  ;;  %v2573_v38 = vrot.slane %v2557_v14, %v4686_v60  ;;  %v2580_v22 = vrot.slane %v2558_v6, %v4686_v60 }
 0x277   : > { %v2587_v48 = vrot.slane %v2559_v16, %v4686_v60  ;;  %v1964_v17 = vrot.slane %v5158_v21, %v4667_v52  ;;  %v1968_v26 = vrot.slane %v5158_v21, %v4670_v51  ;;  %v1972_v32 = vrot.slane %v5158_v21, %v4673_v54 }
 0x278   : > { %v3486_v27 = vcombine.low %v3478_v53, %v3485_v23  ;;  %v2588_v30 = vcombine.low %v2566_v20, %v2573_v38  ;;  %v1976_v63 = vrot.slane %v5158_v21, %v4676_v55  ;;  %v1980_v24 = vrot.slane %v5158_v21, %v4679_v56 }
 0x279   : > { %v2589_v31 = vcombine.low %v2580_v22, %v2587_v48  ;;  %v1984_v10 = vrot.slane %v5158_v21, %v4683_v58  ;;  %v3487_v36 = vcombine.low %v1956_v18, %v1960_v19  ;;  %v3488_v39 = vcombine.low %v1964_v17, %v1968_v26 }
 0x27a   : > { %3673 = vperm.xlu0 %4116, %v3486_v27   ;;  %v2596_v42 = vrot.slane %v2588_v30, %v4686_v60  ;;  %v3489_v43 = vcombine.low %v1972_v32, %v1976_v63  ;;  %v1380_v45 = vrot.slane %v5008_v29, %v4513_v35  ;;  %v1384_v49 = vrot.slane %v5008_v29, %v4519_v37 }
 0x27b   : > { %v2603_v46 = vrot.slane %v2589_v31, %v4686_v60  ;;  %v3490_v25 = vcombine.low %v1980_v24, %v1984_v10  ;;  %v3497_v59 = vrot.slane %v3487_v36, %v4686_v60  ;;  %v3504_v9 = vrot.slane %v3488_v39, %v4686_v60 }
 0x27c   : > { %v3511_v21 = vrot.slane %v3489_v43, %v4686_v60  ;;  %v1388_v47 = vrot.slane %v5008_v29, %v4667_v52  ;;  %v1392_v1 = vrot.slane %v5008_v29, %v4670_v51  ;;  %v1396_v3 = vrot.slane %v5008_v29, %v4673_v54 }
 0x27d   : > { %v2604_v41 = vcombine.low %v2596_v42, %v2603_v46  ;;  %v3518_v57 = vrot.slane %v3490_v25, %v4686_v60  ;;  %v3519_v4 = vcombine.low %v3497_v59, %v3504_v9  ;;  %v1400_v5 = vrot.slane %v5008_v29, %v4676_v55 }
 0x27e   : > { %v1404_v7 = vrot.slane %v5008_v29, %v4679_v56  ;;  %v1408_v40 = vrot.slane %v5008_v29, %v4683_v58  ;;  %v2605_v28 = vcombine.low %v1380_v45, %v1384_v49  ;;  %v2606_v61 = vcombine.low %v1388_v47, %v1392_v1 }
 0x27f   : > { %3619 = vperm.xlu1 %4117, %v2604_v41   ;;  %v3520_v8 = vcombine.low %v3511_v21, %v3518_v57  ;;  %v3527_v50 = vrot.slane %v3519_v4, %v4686_v60  ;;  %v2607_v11 = vcombine.low %v1396_v3, %v1400_v5  ;;  %v1988_v12 = vrot.slane %v5205_v2, %v4513_v35 }
 0x280   : > { %v2608_v15 = vcombine.low %v1404_v7, %v1408_v40  ;;  %v2615_v13 = vrot.slane %v2605_v28, %v4686_v60  ;;  %v2622_v14 = vrot.slane %v2606_v61, %v4686_v60  ;;  %v1992_v6 = vrot.slane %v5205_v2, %v4519_v37 }
 0x281   : > { %v3534_v29 = vrot.slane %v3520_v8, %v4686_v60  ;;  %v2629_v53 = vrot.slane %v2607_v11, %v4686_v60  ;;  %v1996_v16 = vrot.slane %v5205_v2, %v4667_v52  ;;  %v2000_v18 = vrot.slane %v5205_v2, %v4670_v51 }
 0x282   : > { %v2636_v19 = vrot.slane %v2608_v15, %v4686_v60  ;;  %v2637_v23 = vcombine.low %v2615_v13, %v2622_v14  ;;  %v2004_v20 = vrot.slane %v5205_v2, %v4673_v54  ;;  %v2008_v38 = vrot.slane %v5205_v2, %v4676_v55 }
 0x283   : > { %v3535_v22 = vcombine.low %v3527_v50, %v3534_v29  ;;  %v2012_v48 = vrot.slane %v5205_v2, %v4679_v56  ;;  %v2016_v17 = vrot.slane %v5205_v2, %v4683_v58  ;;  %v3536_v26 = vcombine.low %v1988_v12, %v1992_v6 }
 0x284   : > { %v2638_v32 = vcombine.low %v2629_v53, %v2636_v19  ;;  %v2645_v27 = vrot.slane %v2637_v23, %v4686_v60  ;;  %v3537_v30 = vcombine.low %v1996_v16, %v2000_v18  ;;  %v3538_v63 = vcombine.low %v2004_v20, %v2008_v38 }
 0x285   : > { %3676 = vperm.xlu0 %4116, %v3535_v22   ;;  %v3539_v24 = vcombine.low %v2012_v48, %v2016_v17  ;;  %v3546_v31 = vrot.slane %v3536_v26, %v4686_v60  ;;  %v1412_v10 = vrot.slane %v5055_v44, %v4513_v35  ;;  %v1416_v36 = vrot.slane %v5055_v44, %v4519_v37 }
 0x286   : > { %v2652_v39 = vrot.slane %v2638_v32, %v4686_v60  ;;  %v3553_v2 = vrot.slane %v3537_v30, %v4686_v60  ;;  %v3560_v42 = vrot.slane %v3538_v63, %v4686_v60  ;;  %v1420_v43 = vrot.slane %v5055_v44, %v4667_v52 }
 0x287   : > { %v3567_v45 = vrot.slane %v3539_v24, %v4686_v60  ;;  %v1424_v49 = vrot.slane %v5055_v44, %v4670_v51  ;;  %v1428_v46 = vrot.slane %v5055_v44, %v4673_v54  ;;  %v1432_v25 = vrot.slane %v5055_v44, %v4676_v55 }
 0x288   : > { %v2653_v59 = vcombine.low %v2645_v27, %v2652_v39  ;;  %v3568_v9 = vcombine.low %v3546_v31, %v3553_v2  ;;  %v1436_v21 = vrot.slane %v5055_v44, %v4679_v56  ;;  %v1440_v47 = vrot.slane %v5055_v44, %v4683_v58 }
 0x289   : > { %v3569_v1 = vcombine.low %v3560_v42, %v3567_v45  ;;  %v2654_v3 = vcombine.low %v1412_v10, %v1416_v36  ;;  %v2655_v41 = vcombine.low %v1420_v43, %v1424_v49  ;;  %v2656_v57 = vcombine.low %v1428_v46, %v1432_v25 }
 0x28a   : > { %3622 = vperm.xlu1 %4117, %v2653_v59   ;;  %v3576_v4 = vrot.slane %v3568_v9, %v4686_v60  ;;  %v2657_v5 = vcombine.low %v1436_v21, %v1440_v47  ;;  %v1444_v7 = vrot.slane %v5108_v62, %v4513_v35  ;;  %v1448_v40 = vrot.slane %v5108_v62, %v4519_v37  ;;  %v3635_v21 = vpop.permute.xlu1 %3634 }
 0x28b   : > { %v3583_v28 = vrot.slane %v3569_v1, %v4686_v60  ;;  %v2664_v61 = vrot.slane %v2654_v3, %v4686_v60  ;;  %v2671_v44 = vrot.slane %v2655_v41, %v4686_v60  ;;  %v2678_v8 = vrot.slane %v2656_v57, %v4686_v60 }
 0x28c   : > { %v2685_v50 = vrot.slane %v2657_v5, %v4686_v60  ;;  %v1452_v11 = vrot.slane %v5108_v62, %v4667_v52  ;;  %v1456_v12 = vrot.slane %v5108_v62, %v4670_v51  ;;  %v1460_v15 = vrot.slane %v5108_v62, %v4673_v54 }
 0x28d   : > { %v3584_v13 = vcombine.low %v3576_v4, %v3583_v28  ;;  %v2686_v14 = vcombine.low %v2664_v61, %v2671_v44  ;;  %v1464_v6 = vrot.slane %v5108_v62, %v4676_v55  ;;  %v1468_v29 = vrot.slane %v5108_v62, %v4679_v56  ;;  %v5465_v4 = vpop.permute.xlu0 %3586 }
 0x28e   : > { %v2687_v53 = vcombine.low %v2678_v8, %v2685_v50  ;;  %v1472_v16 = vrot.slane %v5108_v62, %v4683_v58  ;;  %v2703_v18 = vcombine.low %v1444_v7, %v1448_v40  ;;  %v2704_v19 = vcombine.low %v1452_v11, %v1456_v12  ;;  %v5457_v47 = vpop.permute.xlu1 %3589 }
 0x28f   : > { %3679 = vperm.xlu0 %4116, %v3584_v13   ;;  %v2694_v23 = vrot.slane %v2686_v14, %v4686_v60  ;;  %v2705_v20 = vcombine.low %v1460_v15, %v1464_v6  ;;  %v1476_v38 = vrot.slane %v5155_v0, %v4513_v35  ;;  %v1480_v22 = vrot.slane %v5155_v0, %v4519_v37 }
 0x290   : > { %v2701_v48 = vrot.slane %v2687_v53, %v4686_v60  ;;  %v2706_v17 = vcombine.low %v1468_v29, %v1472_v16  ;;  %v2713_v26 = vrot.slane %v2703_v18, %v4686_v60  ;;  %v2720_v32 = vrot.slane %v2704_v19, %v4686_v60 }
 0x291   : > { %v2727_v62 = vrot.slane %v2705_v20, %v4686_v60  ;;  %v1484_v27 = vrot.slane %v5155_v0, %v4667_v52  ;;  %v1488_v30 = vrot.slane %v5155_v0, %v4670_v51  ;;  %v1492_v35 = vrot.slane %v5155_v0, %v4673_v54  ;;  %v3638_v7 = vpop.permute.xlu0 %3637 }
 0x292   : > { %v2702_v63 = vcombine.low %v2694_v23, %v2701_v48  ;;  %v2734_v37 = vrot.slane %v2706_v17, %v4686_v60  ;;  %v2735_v24 = vcombine.low %v2713_v26, %v2720_v32  ;;  %v1496_v31 = vrot.slane %v5155_v0, %v4676_v55  ;;  %v5459_v1 = vpop.permute.xlu1 %3592 }
 0x293   : > { %v1500_v10 = vrot.slane %v5155_v0, %v4679_v56  ;;  %v1504_v36 = vrot.slane %v5155_v0, %v4683_v58  ;;  %v2752_v52 = vcombine.low %v1476_v38, %v1480_v22  ;;  %v2753_v39 = vcombine.low %v1484_v27, %v1488_v30 }
 0x294   : > { %3625 = vperm.xlu1 %4117, %v2702_v63   ;;  %v2736_v51 = vcombine.low %v2727_v62, %v2734_v37  ;;  %v2743_v2 = vrot.slane %v2735_v24, %v4686_v60  ;;  %v2754_v54 = vcombine.low %v1492_v35, %v1496_v31  ;;  %v5478_v15 = vand.u32 127, %v312_v33 }
 0x295   : > { %v2755_v42 = vcombine.low %v1500_v10, %v1504_v36  ;;  %v2762_v43 = vrot.slane %v2752_v52, %v4686_v60  ;;  %v2769_v45 = vrot.slane %v2753_v39, %v4686_v60  ;;  %v3644_v28 = vpop.permute.xlu0 %3643 }
 0x296   : > { %v2750_v55 = vrot.slane %v2736_v51, %v4686_v60  ;;  %v2776_v49 = vrot.slane %v2754_v54, %v4686_v60  ;;  %v3641_v3 = vpop.permute.xlu1 %3640  ;;  %v3687_v6 = vadd.s32 4294967288, %v5478_v15  ;;  %v3694_v29 = vadd.s32 4294967280, %v5478_v15 }
 0x297   : > { %v2783_v56 = vrot.slane %v2755_v42, %v4686_v60  ;;  %v2784_v46 = vcombine.low %v2762_v43, %v2769_v45  ;;  %v3701_v16 = vadd.s32 4294967272, %v5478_v15  ;;  %v3685_v23 = vsub.s32 %v5478_v15, %v4510_v34 }
 0x298   : > { %v2751_v58 = vcombine.low %v2743_v2, %v2750_v55  ;;  %v3690_v53 = vsub.s32 %v3687_v6, %v4510_v34  ;;  %v3697_v20 = vsub.s32 %v3694_v29, %v4510_v34  ;;  %v3708_v38 = vadd.s32 4294967264, %v5478_v15 }
 0x299   : > { %v2785_v0 = vcombine.low %v2776_v49, %v2783_v56  ;;  %v2792_v25 = vrot.slane %v2784_v46, %v4686_v60  ;;  %v3795_v22 = vrot.slane %v3635_v21, %v3685_v23  ;;  %v3704_v17 = vsub.s32 %v3701_v16, %v4510_v34 }
 0x29a   : > { %3628 = vperm.xlu1 %4117, %v2751_v58   ;;  %v3799_v48 = vrot.slane %v3638_v7, %v3690_v53  ;;  %v3804_v26 = vrot.slane %v3641_v3, %v3697_v20  ;;  %v3715_v32 = vadd.s32 4294967256, %v5478_v15  ;;  %v3711_v27 = vsub.s32 %v3708_v38, %v4510_v34 }
 0x29b   : > { %v2799_v59 = vrot.slane %v2785_v0, %v4686_v60  ;;  %v3722_v30 = vadd.s32 4294967248, %v5478_v15  ;;  %v3809_v37 = vrot.slane %v3644_v28, %v3704_v17  ;;  %v3729_v36 = vadd.s32 4294967240, %v5478_v15 }
 0x29c   : > { %v5461_v41 = vpop.permute.xlu1 %3595  ;;  %v3800_v63 = vsel %vm3692_vm0, %v3799_v48, %v3795_v22  ;;  %v3718_v10 = vsub.s32 %v3715_v32, %v4510_v34  ;;  %v3736_v39 = vadd.s32 4294967232, %v5478_v15  ;;  %v3686_v49 = vrot.slane %v5465_v4, %v3685_v23 }
 0x29d   : > { %v2800_v9 = vcombine.low %v2792_v25, %v2799_v59  ;;  %v3805_v24 = vsel %vm3699_vm1, %v3804_v26, %v3800_v63  ;;  %v3725_v52 = vsub.s32 %v3722_v30, %v4510_v34  ;;  %v3732_v55 = vsub.s32 %v3729_v36, %v4510_v34 }
 0x29e   : > { %v3810_v51 = vsel %vm3706_vm2, %v3809_v37, %v3805_v24  ;;  %v3691_v56 = vrot.slane %v5457_v47, %v3690_v53  ;;  %v3739_v46 = vsub.s32 %v3736_v39, %v4510_v34  ;;  %v3698_v58 = vrot.slane %v5459_v1, %v3697_v20 }
 0x29f   : > { %3631 = vperm.xlu1 %4117, %v2800_v9   ;;  %v3743_v0 = vadd.s32 4294967224, %v5478_v15  ;;  %v3750_v9 = vadd.s32 4294967216, %v5478_v15  ;;  %v3705_v3 = vrot.slane %v5461_v41, %v3704_v17  ;;  %v3757_v28 = vadd.s32 4294967208, %v5478_v15 }
 0x2a0   : > { %v3764_v23 = vadd.s32 4294967200, %v5478_v15  ;;  %v3771_v22 = vadd.s32 4294967192, %v5478_v15 }
 0x2a1   : > { %v3746_v7 = vsub.s32 %v3743_v0, %v4510_v34  ;;  %v3753_v41 = vsub.s32 %v3750_v9, %v4510_v34 }
 0x2a2   : > { %v5463_v57 = vpop.permute.xlu1 %3598  ;;  %v3767_v30 = vsub.s32 %v3764_v23, %v4510_v34 }
 0x2a3   : > { %v3712_v6 = vrot.slane %v5463_v57, %v3711_v27  ;;  %v3760_v57 = vsub.s32 %v3757_v28, %v4510_v34 }
 0x2a8   : > { %v3650_v44 = vpop.permute.xlu0 %3649 }
 0x2a9   : > { %v3819_v45 = vrot.slane %v3650_v44, %v3718_v10 }
 0x2ad   : > { %v3647_v5 = vpop.permute.xlu1 %3646 }
 0x2ae   : > { %v3814_v31 = vrot.slane %v3647_v5, %v3711_v27  ;;  %v3693_v5 = vsel %vm3692_vm0, %v3691_v56, %v3686_v49 }
 0x2b0   : > { %v3815_v54 = vsel %vm3713_vm3, %v3814_v31, %v3810_v51 }
 0x2b1   : > { %v3820_v25 = vsel %vm3720_vm4, %v3819_v45, %v3815_v54 }
 0x2b3   : > { %v5471_v50 = vpop.permute.xlu0 %3655 }
 0x2b4   : > { %v3829_v4 = vrot.slane %v5471_v50, %v3732_v55 }
 0x2b8   : > { %v5467_v40 = vpop.permute.xlu1 %3601 }
 0x2b9   : > { %v3719_v53 = vrot.slane %v5467_v40, %v3718_v10 }
 0x2be   : > { %v5475_v12 = vpop.permute.xlu0 %3613 }
 0x2bf   : > { %v3747_v10 = vrot.slane %v5475_v12, %v3746_v7 }
 0x2c3   : > { %v5469_v61 = vpop.permute.xlu1 %3604 }
 0x2c9   : > { %v5482_v14 = vpop.permute.xlu0 %3661 }
 0x2ca   : > { %v3839_v16 = vrot.slane %v5482_v14, %v3746_v7 }
 0x2ce   : > { %v3653_v8 = vpop.permute.xlu1 %3652 }
 0x2cf   : > { %v3824_v42 = vrot.slane %v3653_v8, %v3725_v52  ;;  %v3700_v8 = vsel %vm3699_vm1, %v3698_v58, %v3693_v5 }
 0x2d0   : > { %v3707_v29 = vsel %vm3706_vm2, %v3705_v3, %v3700_v8 }
 0x2d1   : > { %v3825_v59 = vsel %vm3727_vm5, %v3824_v42, %v3820_v25  ;;  %v3714_v17 = vsel %vm3713_vm3, %v3712_v6, %v3707_v29 }
 0x2d2   : > { %v3830_v44 = vsel %vm3734_vm6, %v3829_v4, %v3825_v59  ;;  %v3721_v32 = vsel %vm3720_vm4, %v3719_v53, %v3714_v17 }
 0x2d4   : > { %v5473_v11 = vpop.permute.xlu1 %3607 }
 0x2d5   : > { %v3733_v20 = vrot.slane %v5473_v11, %v3732_v55  ;;  %v3785_v11 = vadd.s32 4294967176, %v5478_v15 }
 0x2d7   : > { %v3788_v39 = vsub.s32 %v3785_v11, %v4510_v34 }
 0x2d9   : > { %v5488_v19 = vpop.permute.xlu0 %3664 }
 0x2da   : > { %v3844_v40 = vrot.slane %v5488_v19, %v3753_v41 }
 0x2df   : > { %v5480_v13 = vpop.permute.xlu1 %3610 }
 0x2e0   : > { %v3740_v14 = vrot.slane %v5480_v13, %v3739_v46  ;;  %v3774_v13 = vsub.s32 %v3771_v22, %v4510_v34 }
 0x2e4   : > { %v5500_v35 = vpop.permute.xlu0 %3667 }
 0x2e5   : > { %v3849_v19 = vrot.slane %v5500_v35, %v3760_v57 }
 0x2e9   : > { %v3659_v18 = vpop.permute.xlu1 %3658 }
 0x2ea   : > { %v3834_v21 = vrot.slane %v3659_v18, %v3739_v46  ;;  %v3726_v18 = vrot.slane %v5469_v61, %v3725_v52  ;;  %v3778_v61 = vadd.s32 4294967184, %v5478_v15 }
 0x2ec   : > { %v3835_v50 = vsel %vm3741_vm7, %v3834_v21, %v3830_v44  ;;  %v3728_v27 = vsel %vm3727_vm5, %v3726_v18, %v3721_v32  ;;  %v3781_v15 = vsub.s32 %v3778_v61, %v4510_v34 }
 0x2ed   : > { %v3840_v38 = vsel %vm3748_vm8, %v3839_v16, %v3835_v50  ;;  %v3735_v37 = vsel %vm3734_vm6, %v3733_v20, %v3728_v27 }
 0x2ee   : > { %v3845_v63 = vsel %vm3755_vm9, %v3844_v40, %v3840_v38  ;;  %v3742_v24 = vsel %vm3741_vm7, %v3740_v14, %v3735_v37 }
 0x2ef   : > { %v5512_v43 = vpop.permute.xlu0 %3670  ;;  %v3850_v36 = vsel %vm3762_vm10, %v3849_v19, %v3845_v63  ;;  %v3749_v45 = vsel %vm3748_vm8, %v3747_v10, %v3742_v24 }
 0x2f0   : > { %v3854_v35 = vrot.slane %v5512_v43, %v3767_v30 }
 0x2f2   : > { %v3855_v12 = vsel %vm3769_vm11, %v3854_v35, %v3850_v36 }
 0x2f4   : > { %v5496_v62 = vpop.permute.xlu1 %3616 }
 0x2f5   : > { %v3754_v31 = vrot.slane %v5496_v62, %v3753_v41 }
 0x2f7   : > { %v3756_v49 = vsel %vm3755_vm9, %v3754_v31, %v3749_v45 }
 0x2f9   : > { %v5528_v1 = vpop.permute.xlu0 %3673 }
 0x2fa   : > { %v3859_v62 = vrot.slane %v5528_v1, %v3774_v13 }
 0x2fc   : > { %v3860_v0 = vsel %vm3776_vm12, %v3859_v62, %v3855_v12 }
 0x2fe   : > { %v5509_v2 = vpop.permute.xlu1 %3619 }
 0x2ff   : > { %v3761_v52 = vrot.slane %v5509_v2, %v3760_v57 }
 0x301   : > { %v3763_v34 = vsel %vm3762_vm10, %v3761_v52, %v3756_v49 }
 0x304   : > { %v3677_v26 = vpop.permute.xlu0 %3676 }
 0x305   : > { %v3864_v2 = vrot.slane %v3677_v26, %v3781_v15 }
 0x307   : > { %v3865_v9 = vsel %vm3783_vm13, %v3864_v2, %v3860_v0 }
 0x309   : > { %v5525_v47 = vpop.permute.xlu1 %3622 }
 0x30a   : > { %v3768_v54 = vrot.slane %v5525_v47, %v3767_v30 }
 0x30c   : > { %v3770_v46 = vsel %vm3769_vm11, %v3768_v54, %v3763_v34 }
 0x30e   : > { %v3680_v42 = vpop.permute.xlu0 %3679 }
 0x30f   : > { %v3869_v43 = vrot.slane %v3680_v42, %v3788_v39 }
 0x311   : > { %v3870_v3 = vsel %vm3790_vm14, %v3869_v43, %v3865_v9 }
 0x313   : > { %v3626_v48 = vpop.permute.xlu1 %3625 }
 0x314   : > { %v3775_v55 = vrot.slane %v3626_v48, %v3774_v13 }
 0x316   : > { %v3777_v25 = vsel %vm3776_vm12, %v3775_v55, %v3770_v46 }
 0x319   : > { %v3629_v51 = vpop.permute.xlu1 %3628 }
 0x31a   : > { %v3782_v56 = vrot.slane %v3629_v51, %v3781_v15 }
 0x31c   : > { %v3784_v21 = vsel %vm3783_vm13, %v3782_v56, %v3777_v25 }
 0x31e   : > { %v3632_v58 = vpop.permute.xlu1 %3631 }
 0x31f   : > { %v3789_v59 = vrot.slane %v3632_v58, %v3788_v39 }
 0x321   : > { %v3791_v4 = vsel %vm3790_vm14, %v3789_v59, %v3784_v21 }
 0x322   : > { %v3871_v47 = vcombine.low %v3791_v4, %v3870_v3 }
 0x324   : > { %v3878_v5 = vrot.slane %v3871_v47, %v4686_v60 }
 0x326   : > { %v3885_v1 = vrot.slane %v3878_v5, %v4686_v60 }
 0x328   : > { %3891 = vst.msk [vmem:[%s258_s10] sm:$0x3] %vm3889_vm15, %v3885_v1 }
 0x329   : > { %4229 = shalt.err (!%p4226_p7)
}
 0x32a   : > { %s4230_s17 = scalar_lea.hbm %s5581_s29, 32  ;;  %s4234_s14 = scalar_lea.hbm %s5629_s5, 128 }
 0x32b   : > { %p4231_p9 = scmp.ne.s32.totalorder %s5581_s29, %s4230_s17  ;;  %p4235_p5 = scmp.lt.u32.totalorder %s5581_s29, %s5629_s5 }
 0x32c   : > { %p4236_p10 = scmp.lt.u32.totalorder %s4234_s14, %s4230_s17  ;;  %p4238_p1 = scmp.lt.u32.totalorder %s4230_s17, %s5581_s29 }
 0x32d   : > { %p4232_p11 = pnand %p4231_p9, %p4413_p12 }
 0x32e   : > { %p4237_p2 = por %p4236_p10, %p4235_p5 }
 0x32f   : > { %p4233_p0 = pneg %p4232_p11 }
 0x330   : > { %p4239_p4 = por %p4238_p1, %p4237_p2 }
 0x332   : > { %p4240_p6 = pnand %p4239_p4, %p4233_p0 }
 0x334   : > { %4243 = shalt.err (!%p4240_p6)
}
 0x335   : > { %4059 = dma.vmem_to_hbm [thread:$0]  (%p4413_p12), %s5583_s12, 32, %s5581_s29, %s3893_s4  }
 0x336 PF: > { %p4076_p8 = scmp.ge.s32.totalorder %s4286_s23, 2  ;;  %s3919_s15 = sand.u32 1, %s4274_s20  }
 0x337   : > { %p5644_p13 = scmp.ne.s32.totalorder %s5634_s26, 0  ;;  %s3920_s11 = scalar_lea.sflag [#allocation5], %s3919_s15 }
 0x339   : > { %p4070_p3 = pnand %p4076_p8, %p5644_p13 }
 0x33b   : > { %4269 = dma.done.wait (!%p4070_p3), %s3920_s11, 32  }
 0x33c   : > { %4271 = vsyncadd (!%p4070_p3), %s3920_s11, 4294967264  ;;  %p20_p7 = scmp.ge.s32.totalorder %s4383_s6, 6   ;;  %s5645_s20 = smov %s4278_s21 }
 0x33d   : > { %s5646_s21 = smov %s4282_s22  ;;  %s5647_s22 = smov %s4409_s28 }
 0x33e   : > { %s5648_s23 = smov %s4383_s6  ;;  %22 = sbr.rel (!%p20_p7) target bundleno = 8 (0x8), region = 89 }
 0x345   :  { %3925 = vsyncpa [#allocation4], 1 }
 0x346   :  { %3927 = vsyncpa [#allocation4 + $0x1], 1 }
 0x347   :  { %3928 = vsyncpa [#allocation7], 1 }
 0x348   :  { %3929 = vsyncpa [#allocation5], 1 }
 0x349   :  { %3931 = vsyncpa [#allocation5 + $0x1], 1 }

</bundles_post_ra>
